<compile_context>
chip_gen: v7x
topology: tpu7x:2x2x1
jax: 0.10.0
libtpu: 0.0.40
codegen_flags: <defaults>
</compile_context>

<pallas_src>
import functools

import jax
import jax.numpy as jnp
from jax.experimental import pallas as pl
from jax.experimental.pallas import tpu as pltpu


def lpkt_kernel(qe_cur_ref, qe_nxt_ref, x1_ref, it_ref, en_ref, h0_ref,
                w1_ref, b1_ref, w23_ref, b23_ref, w4_ref, b4_ref,
                w5_ref, b5_ref,
                out_ref,
                h_sc, lpre_sc, htil_sc):
    c = pl.program_id(1)          # time-chunk index (sequential axis)
    Bb, S, D = h_sc.shape
    chunk = qe_cur_ref.shape[0]
    f32 = jnp.float32

    # ---- first chunk of this batch block: initialize recurrent state -------
    @pl.when(c == 0)
    def _():
        h0 = h0_ref[...]                                         # (S, D)
        h_sc[...] = jnp.broadcast_to(h0[None, :, :], h_sc.shape)
        lpre_sc[...] = jnp.zeros_like(lpre_sc)
        # h_tilde_pre = q_e(t=0) @ h_pre ; h_pre == h0 for every batch row.
        htil_sc[...] = jnp.dot(qe_cur_ref[0], h0, preferred_element_type=f32)

    # Weights / biases: read once per grid step, hoisted out of the time loop.
    w1 = w1_ref[...]
    b1 = b1_ref[...]
    w23 = w23_ref[...]
    b23 = b23_ref[...]
    w4 = w4_ref[...]
    b4 = b4_ref[...]
    w5 = w5_ref[...]
    b5 = b5_ref[...]

    inv_dk = 1.0 / D

    def step(i, carry):
        h_pre, learning_pre, h_tilde_pre = carry
        qe = qe_cur_ref[i]                                       # (Bb, S)
        qen = qe_nxt_ref[i]                                      # (Bb, S)
        x1 = x1_ref[i]                                           # (Bb, 2D+d_a)
        it = it_ref[i]                                           # (Bb, D)
        en = en_ref[i]                                           # (Bb, D)

        # linear_1(cat(e_emb, at_emb, a_rep)) -- input pre-concatenated.
        learning = jnp.dot(x1, w1, preferred_element_type=f32) + b1

        # fused linear_2 || linear_3 on cat(learning_pre, it, learning, h~pre)
        z = (jnp.dot(learning_pre, w23[0:D], preferred_element_type=f32)
             + jnp.dot(it, w23[D:2 * D], preferred_element_type=f32)
             + jnp.dot(learning, w23[2 * D:3 * D], preferred_element_type=f32)
             + jnp.dot(h_tilde_pre, w23[3 * D:4 * D],
                       preferred_element_type=f32)
             + b23)                                              # (Bb, 2D)
        learning_gain = jnp.tanh(z[:, 0:D])
        gamma_l = jax.nn.sigmoid(z[:, D:2 * D])
        LG = gamma_l * (learning_gain + 1.0) * 0.5               # (Bb, D)

        # TODO(synk): dropout on LG_tilde is identity here (eval mode);
        # training dropout would need pltpu.prng_random_bits masking.
        LG_tilde = qe[:, :, None] * LG[:, None, :]               # (Bb, S, D)

        # gamma_f = sigmoid(linear_4(cat(h_pre, LG, it)))
        # per-skill part as ONE flattened matmul; broadcast part as row dots.
        gf_h = jnp.dot(h_pre.reshape(Bb * S, D), w4[0:D],
                       preferred_element_type=f32).reshape(Bb, S, D)
        gf_row = (jnp.dot(LG, w4[D:2 * D], preferred_element_type=f32)
                  + jnp.dot(it, w4[2 * D:3 * D], preferred_element_type=f32)
                  + b4)                                          # (Bb, D)
        gamma_f = jax.nn.sigmoid(gf_h + gf_row[:, None, :])

        h_new = LG_tilde + gamma_f * h_pre                       # (Bb, S, D)

        # h_tilde = q_{e_{t+1}} @ h_new   (S ~ 11: keep the cheap VPU reduce)
        h_tilde = jnp.sum(qen[:, :, None] * h_new, axis=1)       # (Bb, D)

        # y = sigmoid(linear_5(cat(e_emb_{t+1}, h_tilde))).sum(1) / d_k
        y_vec = jax.nn.sigmoid(
            jnp.dot(en, w5[0:D], preferred_element_type=f32)
            + jnp.dot(h_tilde, w5[D:2 * D], preferred_element_type=f32)
            + b5)                                                # (Bb, D)
        y = jnp.sum(y_vec, axis=1) * inv_dk                      # (Bb,)

        # out_shift[c*chunk + i, :] = y   (i.e. pred[:, t+1] = y)
        out_ref[pl.ds(i, 1), :] = y.reshape(1, Bb)

        return h_new, learning, h_tilde

    carry0 = (h_sc[...], lpre_sc[...], htil_sc[...])
    h_out, l_out, ht_out = jax.lax.fori_loop(0, chunk, step, carry0)

    # carry state across chunks
    h_sc[...] = h_out
    lpre_sc[...] = l_out
    htil_sc[...] = ht_out


def lpkt_forward(params, q_matrix, e_data, at_data, a_data, it_data, d_a,
                 *, chunk=64, b_block=None):
    B, T = e_data.shape
    D = params['w2'].shape[1]
    S = q_matrix.shape[1]
    Tm1 = T - 1

    if b_block is None:
        b_block = B                    # v7x: pass b_block=B//2 (multiple of 8)
    assert B % b_block == 0
    n_b = B // b_block

    if Tm1 <= chunk:
        chunk = Tm1                    # single chunk: block == full time dim
    else:
        chunk = max(8, (chunk // 8) * 8)   # sublane-aligned output chunks
    n_chunks = pl.cdiv(Tm1, chunk)
    t_pad = n_chunks * chunk

    # --- embedding gathers / per-step streams (time-major) ------------------
    e_emb = params['e_embed'][e_data]                    # (B, T, D)
    at_emb = params['at_embed'][at_data]                 # (B, T, D)
    it_emb = params['it_embed'][it_data]                 # (B, T, D)
    a_rep = jnp.repeat(a_data[:, :, None].astype(jnp.float32), d_a, axis=2)
    qe_all = q_matrix[e_data]                            # (B, T, S)
    x1_all = jnp.concatenate([e_emb, at_emb, a_rep], axis=2)   # (B, T, 2D+d_a)

    def tm(x, sl):   # (B, T, F) -> (T-1, B, F), time-padded to t_pad
        x = jnp.transpose(x[:, sl], (1, 0, 2))
        if t_pad > Tm1:
            pad = jnp.zeros((t_pad - Tm1,) + x.shape[1:], x.dtype)
            x = jnp.concatenate([x, pad], axis=0)
        return x

    cur = slice(0, Tm1)
    nxt = slice(1, T)
    qe_cur = tm(qe_all, cur)                             # (t_pad, B, S)
    qe_nxt = tm(qe_all, nxt)                             # (t_pad, B, S)
    x1_t = tm(x1_all, cur)                               # (t_pad, B, 2D+d_a)
    it_t = tm(it_emb, cur)                               # (t_pad, B, D)
    en_t = tm(e_emb, nxt)                                # (t_pad, B, D)

    # fused weights: linear_2 || linear_3
    w23 = jnp.concatenate([params['w2'], params['w3']], axis=1)   # (4D, 2D)
    b23 = jnp.concatenate([params['b2'], params['b3']], axis=1)   # (1, 2D)

    def step_spec(F):
        return pl.BlockSpec((chunk, b_block, F), lambda b, c: (c, b, 0))

    def const_spec(shape):
        return pl.BlockSpec(shape, lambda b, c, _n=len(shape): (0,) * _n)

    out_shift = pl.pallas_call(
        lpkt_kernel,
        out_shape=jax.ShapeDtypeStruct((t_pad, B), jnp.float32),
        grid_spec=pltpu.PrefetchScalarGridSpec(
            num_scalar_prefetch=0,
            grid=(n_b, n_chunks),
            in_specs=[
                step_spec(S), step_spec(S),
                step_spec(x1_t.shape[-1]), step_spec(D), step_spec(D),
                const_spec(params['h0'].shape),
                const_spec(params['w1'].shape), const_spec(params['b1'].shape),
                const_spec(w23.shape), const_spec(b23.shape),
                const_spec(params['w4'].shape), const_spec(params['b4'].shape),
                const_spec(params['w5'].shape), const_spec(params['b5'].shape),
            ],
            out_specs=pl.BlockSpec((chunk, b_block), lambda b, c: (c, b)),
            scratch_shapes=[
                pltpu.VMEM((b_block, S, D), jnp.float32),   # h_pre
                pltpu.VMEM((b_block, D), jnp.float32),      # learning_pre
                pltpu.VMEM((b_block, D), jnp.float32),      # h_tilde_pre
            ],
        ),
        compiler_params=pltpu.CompilerParams(
            dimension_semantics=("parallel", "arbitrary")),
    )(qe_cur, qe_nxt, x1_t, it_t, en_t, params['h0'],
      params['w1'], params['b1'], w23, b23,
      params['w4'], params['b4'], params['w5'], params['b5'])

    # pred[:, 0] = 0 ; pred[:, t+1] = out_shift[t]
    pred = jnp.concatenate(
        [jnp.zeros((B, 1), jnp.float32), out_shift[:Tm1].T], axis=1)
    return pred


def lpkt_ref(params, q_matrix, e_data, at_data, a_data, it_data, d_a):
    """Plain-JAX reference mirroring the PyTorch forward, for verification."""
    B, T = e_data.shape
    D = params['w2'].shape[1]
    S = q_matrix.shape[1]
    e_emb = params['e_embed'][e_data]
    at_emb = params['at_embed'][at_data]
    it_emb = params['it_embed'][it_data]
    a_rep = jnp.repeat(a_data[:, :, None].astype(jnp.float32), d_a, axis=2)
    all_learning = (jnp.concatenate([e_emb, at_emb, a_rep], axis=2)
                    @ params['w1'] + params['b1'])

    h_pre = jnp.broadcast_to(params['h0'][None], (B, S, D))
    h_tilde_pre = None
    learning_pre = jnp.zeros((B, D), jnp.float32)
    pred = jnp.zeros((B, T), jnp.float32)
    for t in range(T - 1):
        q_e = q_matrix[e_data[:, t]]
        it = it_emb[:, t]
        if h_tilde_pre is None:
            h_tilde_pre = jnp.einsum('bs,bsd->bd', q_e, h_pre)
        learning = all_learning[:, t]
        cat4 = jnp.concatenate([learning_pre, it, learning, h_tilde_pre], 1)
        learning_gain = jnp.tanh(cat4 @ params['w2'] + params['b2'])
        gamma_l = jax.nn.sigmoid(cat4 @ params['w3'] + params['b3'])
        LG = gamma_l * (learning_gain + 1.0) / 2.0
        LG_tilde = q_e[:, :, None] * LG[:, None, :]
        cat3 = jnp.concatenate(
            [h_pre,
             jnp.broadcast_to(LG[:, None, :], (B, S, D)),
             jnp.broadcast_to(it[:, None, :], (B, S, D))], axis=2)
        gamma_f = jax.nn.sigmoid(cat3 @ params['w4'] + params['b4'])
        h = LG_tilde + gamma_f * h_pre
        h_tilde = jnp.einsum('bs,bsd->bd', q_matrix[e_data[:, t + 1]], h)
        y = jax.nn.sigmoid(
            jnp.concatenate([e_emb[:, t + 1], h_tilde], 1) @ params['w5']
            + params['b5']).sum(1) / D
        pred = pred.at[:, t + 1].set(y)
        learning_pre = learning
        h_pre = h
        h_tilde_pre = h_tilde
    return pred


if __name__ == "__main__":
    key = jax.random.PRNGKey(0)
    # Small shapes consistent with the module's forward.
    n_at, n_it, n_exercise, n_question = 5, 5, 10, 10
    d_a, d_k = 8, 32
    d_e = d_k   # the reference module's e_embed width is d_k; requires d_e == d_k
    B, T = 2, 8
    S = n_question + 1

    keys = jax.random.split(key, 24)

    def xavier(k, shape):
        bound = (6.0 / (shape[0] + shape[1])) ** 0.5
        return jax.random.uniform(k, shape, jnp.float32, -bound, bound)

    params = {
        'at_embed': xavier(keys[0], (n_at + 10, d_k)),
        'it_embed': xavier(keys[1], (n_it + 10, d_k)),
        'e_embed': xavier(keys[2], (n_exercise + 10, d_k)),
        'w1': xavier(keys[3], (d_e + d_k + d_a, d_k)),
        'b1': jax.random.uniform(keys[4], (1, d_k), jnp.float32, -0.1, 0.1),
        'w2': xavier(keys[5], (4 * d_k, d_k)),
        'b2': jax.random.uniform(keys[6], (1, d_k), jnp.float32, -0.1, 0.1),
        'w3': xavier(keys[7], (4 * d_k, d_k)),
        'b3': jax.random.uniform(keys[8], (1, d_k), jnp.float32, -0.1, 0.1),
        'w4': xavier(keys[9], (3 * d_k, d_k)),
        'b4': jax.random.uniform(keys[10], (1, d_k), jnp.float32, -0.1, 0.1),
        'w5': xavier(keys[11], (d_e + d_k, d_k)),
        'b5': jax.random.uniform(keys[12], (1, d_k), jnp.float32, -0.1, 0.1),
        # h_pre init (xavier on (n_question+1, d_k), shared across batch)
        'h0': xavier(keys[13], (S, d_k)),
    }
    q_matrix = ((jax.random.uniform(keys[14], (n_exercise + 10, S)) > 0.5)
                .astype(jnp.float32) + 0.03)

    # ---- test 1: default (single time chunk) --------------------------------
    e_data = jax.random.randint(keys[15], (B, T), 0, n_exercise)
    at_data = jax.random.randint(keys[16], (B, T), 0, n_at)
    it_data = jax.random.randint(keys[17], (B, T), 0, n_it)
    a_data = jax.random.randint(keys[18], (B, T), 0, 2).astype(jnp.float32)

    pred = lpkt_forward(params, q_matrix, e_data, at_data, a_data, it_data, d_a)
    pred = jax.block_until_ready(pred)
    ref = lpkt_ref(params, q_matrix, e_data, at_data, a_data, it_data, d_a)
    assert pred.shape == (B, T)
    assert jnp.allclose(pred, ref, atol=2e-3, rtol=1e-2), (pred, ref)

    # ---- test 2: multi-chunk path (chunk=8, padded last chunk) ---------------
    T2 = 12
    e2 = jax.random.randint(keys[19], (B, T2), 0, n_exercise)
    at2 = jax.random.randint(keys[20], (B, T2), 0, n_at)
    it2 = jax.random.randint(keys[21], (B, T2), 0, n_it)
    a2 = jax.random.randint(keys[22], (B, T2), 0, 2).astype(jnp.float32)

    pred2 = lpkt_forward(params, q_matrix, e2, at2, a2, it2, d_a, chunk=8)
    pred2 = jax.block_until_ready(pred2)
    ref2 = lpkt_ref(params, q_matrix, e2, at2, a2, it2, d_a)
    assert pred2.shape == (B, T2)
    assert jnp.allclose(pred2, ref2, atol=2e-3, rtol=1e-2), (pred2, ref2)

    print("KERNEL_OK")
</pallas_src>

<mosaic_0001>
module attributes {stable_mosaic.version = 11 : i64} {
  func.func @lpkt_kernel(%arg0: i32, %arg1: i32, %arg2: memref<7x2x11xf32, #tpu.memory_space<vmem>>, %arg3: memref<7x2x11xf32, #tpu.memory_space<vmem>>, %arg4: memref<7x2x72xf32, #tpu.memory_space<vmem>>, %arg5: memref<7x2x32xf32, #tpu.memory_space<vmem>>, %arg6: memref<7x2x32xf32, #tpu.memory_space<vmem>>, %arg7: memref<11x32xf32, #tpu.memory_space<vmem>>, %arg8: memref<72x32xf32, #tpu.memory_space<vmem>>, %arg9: memref<1x32xf32, #tpu.memory_space<vmem>>, %arg10: memref<128x64xf32, #tpu.memory_space<vmem>>, %arg11: memref<1x64xf32, #tpu.memory_space<vmem>>, %arg12: memref<96x32xf32, #tpu.memory_space<vmem>>, %arg13: memref<1x32xf32, #tpu.memory_space<vmem>>, %arg14: memref<64x32xf32, #tpu.memory_space<vmem>>, %arg15: memref<1x32xf32, #tpu.memory_space<vmem>>, %arg16: memref<7x2xf32, #tpu.memory_space<vmem>>, %arg17: memref<2x11x32xf32, #tpu.memory_space<vmem>>, %arg18: memref<2x32xf32, #tpu.memory_space<vmem>>, %arg19: memref<2x32xf32, #tpu.memory_space<vmem>>) attributes {dimension_semantics = [#tpu.dimension_semantics<parallel>, #tpu.dimension_semantics<arbitrary>], iteration_bounds = array<i64: 1, 1>, scalar_prefetch = 0 : i64, scratch_operands = 3 : i64, tpu.core_type = #tpu.core_type<tc>, window_params = [{transform_indices = @transform_0, window_bounds = array<i64: 7, 2, 11>}, {transform_indices = @transform_1, window_bounds = array<i64: 7, 2, 11>}, {transform_indices = @transform_2, window_bounds = array<i64: 7, 2, 72>}, {transform_indices = @transform_3, window_bounds = array<i64: 7, 2, 32>}, {transform_indices = @transform_4, window_bounds = array<i64: 7, 2, 32>}, {pipeline_mode = #tpu.pipeline_mode<synchronous>, transform_indices = @transform_5, window_bounds = array<i64: 11, 32>}, {pipeline_mode = #tpu.pipeline_mode<synchronous>, transform_indices = @transform_6, window_bounds = array<i64: 72, 32>}, {pipeline_mode = #tpu.pipeline_mode<synchronous>, transform_indices = @transform_7, window_bounds = array<i64: 1, 32>}, {pipeline_mode = #tpu.pipeline_mode<synchronous>, transform_indices = @transform_8, window_bounds = array<i64: 128, 64>}, {pipeline_mode = #tpu.pipeline_mode<synchronous>, transform_indices = @transform_9, window_bounds = array<i64: 1, 64>}, {pipeline_mode = #tpu.pipeline_mode<synchronous>, transform_indices = @transform_10, window_bounds = array<i64: 96, 32>}, {pipeline_mode = #tpu.pipeline_mode<synchronous>, transform_indices = @transform_11, window_bounds = array<i64: 1, 32>}, {pipeline_mode = #tpu.pipeline_mode<synchronous>, transform_indices = @transform_12, window_bounds = array<i64: 64, 32>}, {pipeline_mode = #tpu.pipeline_mode<synchronous>, transform_indices = @transform_13, window_bounds = array<i64: 1, 32>}, {transform_indices = @transform_14, window_bounds = array<i64: 7, 2>}]} {
    %c0_i32 = arith.constant 0 : i32
    %0 = arith.cmpi eq, %arg1, %c0_i32 : i32
    %1 = arith.extui %0 : i1 to i32
    %c0_i32_0 = arith.constant 0 : i32
    %2 = arith.cmpi ne, %1, %c0_i32_0 : i32
    scf.if %2 {
      %c0_32 = arith.constant 0 : index
      %c0_33 = arith.constant 0 : index
      %19 = vector.load %arg7[%c0_32, %c0_33] : memref<11x32xf32, #tpu.memory_space<vmem>>, vector<11x32xf32>
      %20 = vector.shape_cast %19 : vector<11x32xf32> to vector<1x11x32xf32>
      %21 = vector.shape_cast %20 : vector<1x11x32xf32> to vector<1x11x32xf32>
      %22 = vector.broadcast %21 : vector<1x11x32xf32> to vector<2x11x32xf32>
      %c0_34 = arith.constant 0 : index
      %c0_35 = arith.constant 0 : index
      %c0_36 = arith.constant 0 : index
      %23 = vector.load %arg17[%c0_34, %c0_35, %c0_36] : memref<2x11x32xf32, #tpu.memory_space<vmem>>, vector<2x11x32xf32>
      tpu.vector_store %arg17[%c0_34, %c0_35, %c0_36], %22 {strides = array<i32>} : memref<2x11x32xf32, #tpu.memory_space<vmem>>, vector<2x11x32xf32>,
      %cst = arith.constant 0.000000e+00 : f32
      %24 = vector.broadcast %cst : f32 to vector<2x32xf32>
      %c0_37 = arith.constant 0 : index
      %c0_38 = arith.constant 0 : index
      %25 = vector.load %arg18[%c0_37, %c0_38] : memref<2x32xf32, #tpu.memory_space<vmem>>, vector<2x32xf32>
      tpu.vector_store %arg18[%c0_37, %c0_38], %24 {strides = array<i32>} : memref<2x32xf32, #tpu.memory_space<vmem>>, vector<2x32xf32>,
      %c0_39 = arith.constant 0 : index
      %c0_40 = arith.constant 0 : index
      %c0_41 = arith.constant 0 : index
      %26 = vector.load %arg2[%c0_39, %c0_40, %c0_41] : memref<7x2x11xf32, #tpu.memory_space<vmem>>, vector<1x2x11xf32>
      %27 = vector.shape_cast %26 : vector<1x2x11xf32> to vector<2x11xf32>
      %cst_42 = arith.constant dense<0.000000e+00> : vector<2x32xf32>
      %28 = tpu.matmul %27, %19, %cst_42 {dimension_numbers = #tpu.dot_dimension_numbers<[1], [0], [0], [1], [0, 0, 1, 1], [], []>} : vector<2x11xf32>, vector<11x32xf32>, vector<2x32xf32> -> vector<2x32xf32>
      %c0_43 = arith.constant 0 : index
      %c0_44 = arith.constant 0 : index
      %29 = vector.load %arg19[%c0_43, %c0_44] : memref<2x32xf32, #tpu.memory_space<vmem>>, vector<2x32xf32>
      tpu.vector_store %arg19[%c0_43, %c0_44], %28 {strides = array<i32>} : memref<2x32xf32, #tpu.memory_space<vmem>>, vector<2x32xf32>,
    } else {
    }
    %c0 = arith.constant 0 : index
    %c0_1 = arith.constant 0 : index
    %3 = vector.load %arg8[%c0, %c0_1] : memref<72x32xf32, #tpu.memory_space<vmem>>, vector<72x32xf32>
    %c0_2 = arith.constant 0 : index
    %c0_3 = arith.constant 0 : index
    %4 = vector.load %arg9[%c0_2, %c0_3] : memref<1x32xf32, #tpu.memory_space<vmem>>, vector<1x32xf32>
    %c0_4 = arith.constant 0 : index
    %c0_5 = arith.constant 0 : index
    %5 = vector.load %arg10[%c0_4, %c0_5] : memref<128x64xf32, #tpu.memory_space<vmem>>, vector<128x64xf32>
    %c0_6 = arith.constant 0 : index
    %c0_7 = arith.constant 0 : index
    %6 = vector.load %arg11[%c0_6, %c0_7] : memref<1x64xf32, #tpu.memory_space<vmem>>, vector<1x64xf32>
    %c0_8 = arith.constant 0 : index
    %c0_9 = arith.constant 0 : index
    %7 = vector.load %arg12[%c0_8, %c0_9] : memref<96x32xf32, #tpu.memory_space<vmem>>, vector<96x32xf32>
    %c0_10 = arith.constant 0 : index
    %c0_11 = arith.constant 0 : index
    %8 = vector.load %arg13[%c0_10, %c0_11] : memref<1x32xf32, #tpu.memory_space<vmem>>, vector<1x32xf32>
    %c0_12 = arith.constant 0 : index
    %c0_13 = arith.constant 0 : index
    %9 = vector.load %arg14[%c0_12, %c0_13] : memref<64x32xf32, #tpu.memory_space<vmem>>, vector<64x32xf32>
    %c0_14 = arith.constant 0 : index
    %c0_15 = arith.constant 0 : index
    %10 = vector.load %arg15[%c0_14, %c0_15] : memref<1x32xf32, #tpu.memory_space<vmem>>, vector<1x32xf32>
    %c0_16 = arith.constant 0 : index
    %c0_17 = arith.constant 0 : index
    %c0_18 = arith.constant 0 : index
    %11 = vector.load %arg17[%c0_16, %c0_17, %c0_18] : memref<2x11x32xf32, #tpu.memory_space<vmem>>, vector<2x11x32xf32>
    %c0_19 = arith.constant 0 : index
    %c0_20 = arith.constant 0 : index
    %12 = vector.load %arg18[%c0_19, %c0_20] : memref<2x32xf32, #tpu.memory_space<vmem>>, vector<2x32xf32>
    %c0_21 = arith.constant 0 : index
    %c0_22 = arith.constant 0 : index
    %13 = vector.load %arg19[%c0_21, %c0_22] : memref<2x32xf32, #tpu.memory_space<vmem>>, vector<2x32xf32>
    %c0_i32_23 = arith.constant 0 : i32
    %c7_i32 = arith.constant 7 : i32
    %14 = arith.addi %c0_i32_23, %c7_i32 : i32
    %c1_i32 = arith.constant 1 : i32
    %15:3 = scf.for %arg20 = %c0_i32_23 to %14 step %c1_i32 iter_args(%arg21 = %11, %arg22 = %12, %arg23 = %13) -> (vector<2x11x32xf32>, vector<2x32xf32>, vector<2x32xf32>)  : i32 {
      %19 = arith.index_cast %arg20 : i32 to index
      %c0_32 = arith.constant 0 : index
      %c0_33 = arith.constant 0 : index
      %20 = vector.load %arg2[%19, %c0_32, %c0_33] : memref<7x2x11xf32, #tpu.memory_space<vmem>>, vector<1x2x11xf32>
      %21 = vector.shape_cast %20 : vector<1x2x11xf32> to vector<2x11xf32>
      %22 = arith.index_cast %arg20 : i32 to index
      %c0_34 = arith.constant 0 : index
      %c0_35 = arith.constant 0 : index
      %23 = vector.load %arg3[%22, %c0_34, %c0_35] : memref<7x2x11xf32, #tpu.memory_space<vmem>>, vector<1x2x11xf32>
      %24 = vector.shape_cast %23 : vector<1x2x11xf32> to vector<2x11xf32>
      %25 = arith.index_cast %arg20 : i32 to index
      %c0_36 = arith.constant 0 : index
      %c0_37 = arith.constant 0 : index
      %26 = vector.load %arg4[%25, %c0_36, %c0_37] : memref<7x2x72xf32, #tpu.memory_space<vmem>>, vector<1x2x72xf32>
      %27 = vector.shape_cast %26 : vector<1x2x72xf32> to vector<2x72xf32>
      %28 = arith.index_cast %arg20 : i32 to index
      %c0_38 = arith.constant 0 : index
      %c0_39 = arith.constant 0 : index
      %29 = vector.load %arg5[%28, %c0_38, %c0_39] : memref<7x2x32xf32, #tpu.memory_space<vmem>>, vector<1x2x32xf32>
      %30 = vector.shape_cast %29 : vector<1x2x32xf32> to vector<2x32xf32>
      %31 = arith.index_cast %arg20 : i32 to index
      %c0_40 = arith.constant 0 : index
      %c0_41 = arith.constant 0 : index
      %32 = vector.load %arg6[%31, %c0_40, %c0_41] : memref<7x2x32xf32, #tpu.memory_space<vmem>>, vector<1x2x32xf32>
      %33 = vector.shape_cast %32 : vector<1x2x32xf32> to vector<2x32xf32>
      %cst = arith.constant dense<0.000000e+00> : vector<2x32xf32>
      %34 = tpu.matmul %27, %3, %cst {dimension_numbers = #tpu.dot_dimension_numbers<[1], [0], [0], [1], [0, 0, 1, 1], [], []>} : vector<2x72xf32>, vector<72x32xf32>, vector<2x32xf32> -> vector<2x32xf32>
      %35 = vector.broadcast %4 : vector<1x32xf32> to vector<2x32xf32>
      %36 = arith.addf %34, %35 : vector<2x32xf32>
      %37 = vector.extract_strided_slice %5 {offsets = [0, 0], sizes = [32, 64], strides = [1, 1]} : vector<128x64xf32> to vector<32x64xf32>
      %cst_42 = arith.constant dense<0.000000e+00> : vector<2x64xf32>
      %38 = tpu.matmul %arg22, %37, %cst_42 {dimension_numbers = #tpu.dot_dimension_numbers<[1], [0], [0], [1], [0, 0, 1, 1], [], []>} : vector<2x32xf32>, vector<32x64xf32>, vector<2x64xf32> -> vector<2x64xf32>
      %39 = vector.extract_strided_slice %5 {offsets = [32, 0], sizes = [32, 64], strides = [1, 1]} : vector<128x64xf32> to vector<32x64xf32>
      %cst_43 = arith.constant dense<0.000000e+00> : vector<2x64xf32>
      %40 = tpu.matmul %30, %39, %cst_43 {dimension_numbers = #tpu.dot_dimension_numbers<[1], [0], [0], [1], [0, 0, 1, 1], [], []>} : vector<2x32xf32>, vector<32x64xf32>, vector<2x64xf32> -> vector<2x64xf32>
      %41 = arith.addf %38, %40 : vector<2x64xf32>
      %42 = vector.extract_strided_slice %5 {offsets = [64, 0], sizes = [32, 64], strides = [1, 1]} : vector<128x64xf32> to vector<32x64xf32>
      %cst_44 = arith.constant dense<0.000000e+00> : vector<2x64xf32>
      %43 = tpu.matmul %36, %42, %cst_44 {dimension_numbers = #tpu.dot_dimension_numbers<[1], [0], [0], [1], [0, 0, 1, 1], [], []>} : vector<2x32xf32>, vector<32x64xf32>, vector<2x64xf32> -> vector<2x64xf32>
      %44 = arith.addf %41, %43 : vector<2x64xf32>
      %45 = vector.extract_strided_slice %5 {offsets = [96, 0], sizes = [32, 64], strides = [1, 1]} : vector<128x64xf32> to vector<32x64xf32>
      %cst_45 = arith.constant dense<0.000000e+00> : vector<2x64xf32>
      %46 = tpu.matmul %arg23, %45, %cst_45 {dimension_numbers = #tpu.dot_dimension_numbers<[1], [0], [0], [1], [0, 0, 1, 1], [], []>} : vector<2x32xf32>, vector<32x64xf32>, vector<2x64xf32> -> vector<2x64xf32>
      %47 = arith.addf %44, %46 : vector<2x64xf32>
      %48 = vector.broadcast %6 : vector<1x64xf32> to vector<2x64xf32>
      %49 = arith.addf %47, %48 : vector<2x64xf32>
      %50 = vector.extract_strided_slice %49 {offsets = [0, 0], sizes = [2, 32], strides = [1, 1]} : vector<2x64xf32> to vector<2x32xf32>
      %51 = math.tanh %50 : vector<2x32xf32>
      %52 = vector.extract_strided_slice %49 {offsets = [0, 32], sizes = [2, 32], strides = [1, 1]} : vector<2x64xf32> to vector<2x32xf32>
      %53 = arith.negf %52 : vector<2x32xf32>
      %54 = math.exp %53 : vector<2x32xf32>
      %cst_46 = arith.constant 1.000000e+00 : f32
      %55 = vector.broadcast %cst_46 : f32 to vector<2x32xf32>
      %56 = arith.addf %55, %54 : vector<2x32xf32>
      %57 = arith.divf %55, %56 : vector<2x32xf32>
      %cst_47 = arith.constant 1.000000e+00 : f32
      %58 = vector.broadcast %cst_47 : f32 to vector<2x32xf32>
      %59 = arith.addf %51, %58 : vector<2x32xf32>
      %60 = arith.mulf %57, %59 : vector<2x32xf32>
      %cst_48 = arith.constant 5.000000e-01 : f32
      %61 = vector.broadcast %cst_48 : f32 to vector<2x32xf32>
      %62 = arith.mulf %60, %61 : vector<2x32xf32>
      %63 = vector.shape_cast %21 : vector<2x11xf32> to vector<2x11x1xf32>
      %64 = vector.shape_cast %62 : vector<2x32xf32> to vector<2x1x32xf32>
      %65 = vector.broadcast %63 : vector<2x11x1xf32> to vector<2x11x32xf32>
      %66 = vector.broadcast %64 : vector<2x1x32xf32> to vector<2x11x32xf32>
      %67 = arith.mulf %65, %66 : vector<2x11x32xf32>
      %68 = vector.shape_cast %arg21 : vector<2x11x32xf32> to vector<22x32xf32>
      %69 = vector.extract_strided_slice %7 {offsets = [0, 0], sizes = [32, 32], strides = [1, 1]} : vector<96x32xf32> to vector<32x32xf32>
      %cst_49 = arith.constant dense<0.000000e+00> : vector<22x32xf32>
      %70 = tpu.matmul %68, %69, %cst_49 {dimension_numbers = #tpu.dot_dimension_numbers<[1], [0], [0], [1], [0, 0, 1, 1], [], []>} : vector<22x32xf32>, vector<32x32xf32>, vector<22x32xf32> -> vector<22x32xf32>
      %71 = vector.shape_cast %70 : vector<22x32xf32> to vector<2x11x32xf32>
      %72 = vector.extract_strided_slice %7 {offsets = [32, 0], sizes = [32, 32], strides = [1, 1]} : vector<96x32xf32> to vector<32x32xf32>
      %cst_50 = arith.constant dense<0.000000e+00> : vector<2x32xf32>
      %73 = tpu.matmul %62, %72, %cst_50 {dimension_numbers = #tpu.dot_dimension_numbers<[1], [0], [0], [1], [0, 0, 1, 1], [], []>} : vector<2x32xf32>, vector<32x32xf32>, vector<2x32xf32> -> vector<2x32xf32>
      %74 = vector.extract_strided_slice %7 {offsets = [64, 0], sizes = [32, 32], strides = [1, 1]} : vector<96x32xf32> to vector<32x32xf32>
      %cst_51 = arith.constant dense<0.000000e+00> : vector<2x32xf32>
      %75 = tpu.matmul %30, %74, %cst_51 {dimension_numbers = #tpu.dot_dimension_numbers<[1], [0], [0], [1], [0, 0, 1, 1], [], []>} : vector<2x32xf32>, vector<32x32xf32>, vector<2x32xf32> -> vector<2x32xf32>
      %76 = arith.addf %73, %75 : vector<2x32xf32>
      %77 = vector.broadcast %8 : vector<1x32xf32> to vector<2x32xf32>
      %78 = arith.addf %76, %77 : vector<2x32xf32>
      %79 = vector.shape_cast %78 : vector<2x32xf32> to vector<2x1x32xf32>
      %80 = vector.broadcast %79 : vector<2x1x32xf32> to vector<2x11x32xf32>
      %81 = arith.addf %71, %80 : vector<2x11x32xf32>
      %82 = arith.negf %81 : vector<2x11x32xf32>
      %83 = math.exp %82 : vector<2x11x32xf32>
      %cst_52 = arith.constant 1.000000e+00 : f32
      %84 = vector.broadcast %cst_52 : f32 to vector<2x11x32xf32>
      %85 = arith.addf %84, %83 : vector<2x11x32xf32>
      %86 = arith.divf %84, %85 : vector<2x11x32xf32>
      %87 = arith.mulf %86, %arg21 : vector<2x11x32xf32>
      %88 = arith.addf %67, %87 : vector<2x11x32xf32>
      %89 = vector.shape_cast %24 : vector<2x11xf32> to vector<2x11x1xf32>
      %90 = vector.broadcast %89 : vector<2x11x1xf32> to vector<2x11x32xf32>
      %91 = arith.mulf %90, %88 : vector<2x11x32xf32>
      %cst_53 = arith.constant dense<0.000000e+00> : vector<2x32xf32>
      %92 = vector.multi_reduction <add>, %91, %cst_53 [1] : vector<2x11x32xf32> to vector<2x32xf32>
      %93 = vector.extract_strided_slice %9 {offsets = [0, 0], sizes = [32, 32], strides = [1, 1]} : vector<64x32xf32> to vector<32x32xf32>
      %cst_54 = arith.constant dense<0.000000e+00> : vector<2x32xf32>
      %94 = tpu.matmul %33, %93, %cst_54 {dimension_numbers = #tpu.dot_dimension_numbers<[1], [0], [0], [1], [0, 0, 1, 1], [], []>} : vector<2x32xf32>, vector<32x32xf32>, vector<2x32xf32> -> vector<2x32xf32>
      %95 = vector.extract_strided_slice %9 {offsets = [32, 0], sizes = [32, 32], strides = [1, 1]} : vector<64x32xf32> to vector<32x32xf32>
      %cst_55 = arith.constant dense<0.000000e+00> : vector<2x32xf32>
      %96 = tpu.matmul %92, %95, %cst_55 {dimension_numbers = #tpu.dot_dimension_numbers<[1], [0], [0], [1], [0, 0, 1, 1], [], []>} : vector<2x32xf32>, vector<32x32xf32>, vector<2x32xf32> -> vector<2x32xf32>
      %97 = arith.addf %94, %96 : vector<2x32xf32>
      %98 = vector.broadcast %10 : vector<1x32xf32> to vector<2x32xf32>
      %99 = arith.addf %97, %98 : vector<2x32xf32>
      %100 = arith.negf %99 : vector<2x32xf32>
      %101 = math.exp %100 : vector<2x32xf32>
      %cst_56 = arith.constant 1.000000e+00 : f32
      %102 = vector.broadcast %cst_56 : f32 to vector<2x32xf32>
      %103 = arith.addf %102, %101 : vector<2x32xf32>
      %104 = arith.divf %102, %103 : vector<2x32xf32>
      %cst_57 = arith.constant dense<0.000000e+00> : vector<2xf32>
      %105 = vector.multi_reduction <add>, %104, %cst_57 [1] : vector<2x32xf32> to vector<2xf32>
      %cst_58 = arith.constant 3.125000e-02 : f32
      %106 = vector.broadcast %cst_58 : f32 to vector<2xf32>
      %107 = arith.mulf %105, %106 : vector<2xf32>
      %108 = vector.shape_cast %107 : vector<2xf32> to vector<1x2xf32>
      %109 = arith.index_cast %arg20 : i32 to index
      %c0_59 = arith.constant 0 : index
      %110 = vector.load %arg16[%109, %c0_59] : memref<7x2xf32, #tpu.memory_space<vmem>>, vector<1x2xf32>
      tpu.vector_store %arg16[%109, %c0_59], %108 {strides = array<i32>} : memref<7x2xf32, #tpu.memory_space<vmem>>, vector<1x2xf32>,
      scf.yield %88, %36, %92 : vector<2x11x32xf32>, vector<2x32xf32>, vector<2x32xf32>
    }
    %c7_i32_24 = arith.constant 7 : i32
    %c0_25 = arith.constant 0 : index
    %c0_26 = arith.constant 0 : index
    %c0_27 = arith.constant 0 : index
    %16 = vector.load %arg17[%c0_25, %c0_26, %c0_27] : memref<2x11x32xf32, #tpu.memory_space<vmem>>, vector<2x11x32xf32>
    tpu.vector_store %arg17[%c0_25, %c0_26, %c0_27], %15#0 {strides = array<i32>} : memref<2x11x32xf32, #tpu.memory_space<vmem>>, vector<2x11x32xf32>,
    %c0_28 = arith.constant 0 : index
    %c0_29 = arith.constant 0 : index
    %17 = vector.load %arg18[%c0_28, %c0_29] : memref<2x32xf32, #tpu.memory_space<vmem>>, vector<2x32xf32>
    tpu.vector_store %arg18[%c0_28, %c0_29], %15#1 {strides = array<i32>} : memref<2x32xf32, #tpu.memory_space<vmem>>, vector<2x32xf32>,
    %c0_30 = arith.constant 0 : index
    %c0_31 = arith.constant 0 : index
    %18 = vector.load %arg19[%c0_30, %c0_31] : memref<2x32xf32, #tpu.memory_space<vmem>>, vector<2x32xf32>
    tpu.vector_store %arg19[%c0_30, %c0_31], %15#2 {strides = array<i32>} : memref<2x32xf32, #tpu.memory_space<vmem>>, vector<2x32xf32>,
    return
  }
  func.func @transform_0(%arg0: i32, %arg1: i32) -> (i32, i32, i32) {
    %c0_i32 = arith.constant 0 : i32
    %c0_i32_0 = arith.constant 0 : i32
    return %arg1, %arg0, %c0_i32 : i32, i32, i32
  }
  func.func @transform_1(%arg0: i32, %arg1: i32) -> (i32, i32, i32) {
    %c0_i32 = arith.constant 0 : i32
    %c0_i32_0 = arith.constant 0 : i32
    return %arg1, %arg0, %c0_i32 : i32, i32, i32
  }
  func.func @transform_2(%arg0: i32, %arg1: i32) -> (i32, i32, i32) {
    %c0_i32 = arith.constant 0 : i32
    %c0_i32_0 = arith.constant 0 : i32
    return %arg1, %arg0, %c0_i32 : i32, i32, i32
  }
  func.func @transform_3(%arg0: i32, %arg1: i32) -> (i32, i32, i32) {
    %c0_i32 = arith.constant 0 : i32
    %c0_i32_0 = arith.constant 0 : i32
    return %arg1, %arg0, %c0_i32 : i32, i32, i32
  }
  func.func @transform_4(%arg0: i32, %arg1: i32) -> (i32, i32, i32) {
    %c0_i32 = arith.constant 0 : i32
    %c0_i32_0 = arith.constant 0 : i32
    return %arg1, %arg0, %c0_i32 : i32, i32, i32
  }
  func.func @transform_5(%arg0: i32, %arg1: i32) -> (i32, i32) {
    %c0_i32 = arith.constant 0 : i32
    %c0_i32_0 = arith.constant 0 : i32
    %c0_i32_1 = arith.constant 0 : i32
    return %c0_i32, %c0_i32_0 : i32, i32
  }
  func.func @transform_6(%arg0: i32, %arg1: i32) -> (i32, i32) {
    %c0_i32 = arith.constant 0 : i32
    %c0_i32_0 = arith.constant 0 : i32
    %c0_i32_1 = arith.constant 0 : i32
    return %c0_i32, %c0_i32_0 : i32, i32
  }
  func.func @transform_7(%arg0: i32, %arg1: i32) -> (i32, i32) {
    %c0_i32 = arith.constant 0 : i32
    %c0_i32_0 = arith.constant 0 : i32
    %c0_i32_1 = arith.constant 0 : i32
    return %c0_i32, %c0_i32_0 : i32, i32
  }
  func.func @transform_8(%arg0: i32, %arg1: i32) -> (i32, i32) {
    %c0_i32 = arith.constant 0 : i32
    %c0_i32_0 = arith.constant 0 : i32
    %c0_i32_1 = arith.constant 0 : i32
    return %c0_i32, %c0_i32_0 : i32, i32
  }
  func.func @transform_9(%arg0: i32, %arg1: i32) -> (i32, i32) {
    %c0_i32 = arith.constant 0 : i32
    %c0_i32_0 = arith.constant 0 : i32
    %c0_i32_1 = arith.constant 0 : i32
    return %c0_i32, %c0_i32_0 : i32, i32
  }
  func.func @transform_10(%arg0: i32, %arg1: i32) -> (i32, i32) {
    %c0_i32 = arith.constant 0 : i32
    %c0_i32_0 = arith.constant 0 : i32
    %c0_i32_1 = arith.constant 0 : i32
    return %c0_i32, %c0_i32_0 : i32, i32
  }
  func.func @transform_11(%arg0: i32, %arg1: i32) -> (i32, i32) {
    %c0_i32 = arith.constant 0 : i32
    %c0_i32_0 = arith.constant 0 : i32
    %c0_i32_1 = arith.constant 0 : i32
    return %c0_i32, %c0_i32_0 : i32, i32
  }
  func.func @transform_12(%arg0: i32, %arg1: i32) -> (i32, i32) {
    %c0_i32 = arith.constant 0 : i32
    %c0_i32_0 = arith.constant 0 : i32
    %c0_i32_1 = arith.constant 0 : i32
    return %c0_i32, %c0_i32_0 : i32, i32
  }
  func.func @transform_13(%arg0: i32, %arg1: i32) -> (i32, i32) {
    %c0_i32 = arith.constant 0 : i32
    %c0_i32_0 = arith.constant 0 : i32
    %c0_i32_1 = arith.constant 0 : i32
    return %c0_i32, %c0_i32_0 : i32, i32
  }
  func.func @transform_14(%arg0: i32, %arg1: i32) -> (i32, i32) {
    %c0_i32 = arith.constant 0 : i32
    return %arg1, %arg0 : i32, i32
  }
}

</mosaic_0001>

<bundles_post_ra>
// kernel: tpu_custom_call.1
= control target key start
LH: loop header
LB: loop body
LE: loop exit
PB: predicated region body
PF: predicated region fallthrough
CT: control target
= control target key end

     0   :  { %vm53_vm0 = vcmask 261120   ;;  %vm55_vm1 = vcmask 256000   ;;  %vm66_vm2 = vcmask 1042432   ;;  %v2710_v0 = vmov 0.0|0.0   ;;  %s3555_s1 = inlined_call_operand.vmem [shape: f32[7,2,11], index: 1, kind: input, shape index: {}]   ;;  %s3556_s2 = inlined_call_operand.vmem [shape: f32[7,2,72], index: 2, kind: input, shape index: {}]   ;;  %s3557_s3 = inlined_call_operand.vmem [shape: f32[7,2,32], index: 3, kind: input, shape index: {}]   ;;  %s3558_s4 = inlined_call_operand.vmem [shape: f32[7,2,32], index: 4, kind: input, shape index: {}]   ;;  %s3559_s14 = inlined_call_operand.vmem [shape: f32[7,2], index: 14, kind: output, shape index: {}]   ;;  %s3560_s5 = inlined_call_operand.vmem [shape: f32[11,32], index: 5, kind: input, shape index: {}]   ;;  %s3561_s0 = inlined_call_operand.vmem [shape: f32[7,2,11], index: 0, kind: input, shape index: {}]   ;;  %s3562_s6 = inlined_call_operand.vmem [shape: f32[72,32], index: 6, kind: input, shape index: {}]   ;;  %s3563_s7 = inlined_call_operand.vmem [shape: f32[1,32], index: 7, kind: input, shape index: {}]   ;;  %s3564_s8 = inlined_call_operand.vmem [shape: f32[128,64], index: 8, kind: input, shape index: {}]   ;;  %s3565_s9 = inlined_call_operand.vmem [shape: f32[1,64], index: 9, kind: input, shape index: {}]   ;;  %s3566_s10 = inlined_call_operand.vmem [shape: f32[96,32], index: 10, kind: input, shape index: {}]   ;;  %s3567_s11 = inlined_call_operand.vmem [shape: f32[1,32], index: 11, kind: input, shape index: {}]   ;;  %s3568_s12 = inlined_call_operand.vmem [shape: f32[64,32], index: 12, kind: input, shape index: {}]   ;;  %s3569_s13 = inlined_call_operand.vmem [shape: f32[1,32], index: 13, kind: input, shape index: {}]  }
   0x1   :  { %2420 = vmatprep.subr.bf16.mxu0 %v2710_v0  ;;  %v51_v1 = vld [vmem:[%s3560_s5] sm:$0xff]  ;;  %v52_v2 = vld [vmem:[%s3560_s5 + $0x8] sm:$0x7]  ;;  %vm59_vm3 = vcmask 254976   ;;  %vm2711_vm4 = vmmov 1   ;;  %v2712_v4 = vmov 0.0  }
   0x2   :  { %54 = vst.msk [vmem:[#allocation2] sm:$0xff] %vm53_vm0, %v51_v1  ;;  %57 = vst.msk [vmem:[#allocation2 + $0x10] sm:$0xff] %vm53_vm0, %v51_v1  ;;  %v2421_v3 = vpack.c.bf16 %v52_v2, %v51_v1  ;;  %vm2713_vm6 = vmmov 0   ;;  %v61_v5 = vld [vmem:[%s3561_s0] sm:$0x3]  ;;  %vm62_vm7 = vcmask 89088  }
   0x3   :  { %56 = vst.msk [vmem:[#allocation2 + $0x8] sm:$0x7] %vm55_vm1, %v52_v2  ;;  %58 = vst.msk [vmem:[#allocation2 + $0x18] sm:$0x7] %vm55_vm1, %v52_v2  ;;  %2291 = vmatprep.mubr.msk.f32.mxu0 %vm2713_vm6, %v2712_v4  ;;  %v2820_v11 = vld [vmem:[%s3562_s6] sm:$0xff]  ;;  %v2825_v12 = vld [vmem:[%s3562_s6 + $0x8] sm:$0xff] }
   0x4   :  { %vm2422_vm5 = vmpackc.low %vm66_vm2, %vm2711_vm4  ;;  %60 = vst.msk [vmem:[#allocation3] sm:$0x3] %vm59_vm3, %v2712_v4  ;;  %v2830_v13 = vld [vmem:[%s3562_s6 + $0x10] sm:$0xff]  ;;  %v2835_v14 = vld [vmem:[%s3562_s6 + $0x18] sm:$0xff] }
   0x5   :  { %2423 = vmatpush3.bf16.msk.msra.mxu0 %vm2422_vm5, %v2421_v3  ;;  %3589 = vst [vmem:[#allocation5_spill] sm:$0xff] %v2820_v11  ;;  %3590 = vst [vmem:[#allocation6_spill] sm:$0xff] %v2825_v12  ;;  %v2840_v15 = vld [vmem:[%s3562_s6 + $0x20] sm:$0xff]  ;;  %v2845_v16 = vld [vmem:[%s3562_s6 + $0x28] sm:$0xff] }
   0x6   :  { %3591 = vst [vmem:[#allocation7_spill] sm:$0xff] %v2830_v13  ;;  %3592 = vst [vmem:[#allocation8_spill] sm:$0xff] %v2835_v14  ;;  %v2850_v17 = vld [vmem:[%s3562_s6 + $0x30] sm:$0xff]  ;;  %v2855_v18 = vld [vmem:[%s3562_s6 + $0x38] sm:$0xff] }
   0x7   :  { %3593 = vst [vmem:[#allocation9_spill] sm:$0xff] %v2840_v15  ;;  %3594 = vst [vmem:[#allocation10_spill] sm:$0xff] %v2845_v16  ;;  %v2860_v19 = vld [vmem:[%s3562_s6 + $0x40] sm:$0xff]  ;;  %v2875_v22 = vld [vmem:[%s3564_s8 + $0x8] sm:$0xff] }
   0x8   :  { %2292 = vmatmul.mubr.msk.f32.vlgmr.msra.gmra.mrb[0].mxu0 %vm62_vm7, %v61_v5  ;;  %3595 = vst [vmem:[#allocation11_spill] sm:$0xff] %v2850_v17  ;;  %3596 = vst [vmem:[#allocation12_spill] sm:$0xff] %v2855_v18  ;;  %v2865_v20 = vld [vmem:[%s3563_s7] ss:$0 sm:$0xff]  ;;  %v2880_v23 = vld [vmem:[%s3564_s8 + $0x10] sm:$0xff] }
   0x9   :  { %v2809_v6 = vld [vmem:[#allocation2] sm:$0xff]   ;;  %v2813_v8 = vld [vmem:[#allocation2 + $0x10] sm:$0xff]   ;;  %3597 = vst [vmem:[#allocation13_spill] sm:$0xff] %v2860_v19  ;;  %3598 = vst [vmem:[#allocation14_spill] sm:$0xff] %v2865_v20 }
   0xa   :  { %v2811_v7 = vld [vmem:[#allocation2 + $0x8] sm:$0x7]   ;;  %v2815_v9 = vld [vmem:[#allocation2 + $0x18] sm:$0x7]   ;;  %v2870_v21 = vld [vmem:[%s3564_s8] sm:$0xff]  ;;  %3600 = vst [vmem:[#allocation16_spill] sm:$0xff] %v2875_v22 }
   0xb   :  { %v194_v10 = vld [vmem:[#allocation3] sm:$0x3]   ;;  %3599 = vst [vmem:[#allocation15_spill] sm:$0xff] %v2870_v21  ;;  %3601 = vst [vmem:[#allocation17_spill] sm:$0xff] %v2880_v23  ;;  %v2885_v24 = vld [vmem:[%s3564_s8 + $0x18] sm:$0xff] }
   0xc   :  { %3602 = vst [vmem:[#allocation18_spill] sm:$0xff] %v2885_v24  ;;  %v2890_v25 = vld [vmem:[%s3564_s8 + $0x20] sm:$0xff]  ;;  %v2895_v26 = vld [vmem:[%s3564_s8 + $0x28] sm:$0xff]  ;;  %v2900_v27 = vld [vmem:[%s3564_s8 + $0x30] sm:$0xff] }
   0xd   :  { %3603 = vst [vmem:[#allocation19_spill] sm:$0xff] %v2890_v25  ;;  %3604 = vst [vmem:[#allocation20_spill] sm:$0xff] %v2895_v26  ;;  %v2905_v28 = vld [vmem:[%s3564_s8 + $0x38] sm:$0xff]  ;;  %v2910_v29 = vld [vmem:[%s3564_s8 + $0x40] sm:$0xff] }
   0xe   :  { %3605 = vst [vmem:[#allocation21_spill] sm:$0xff] %v2900_v27  ;;  %3606 = vst [vmem:[#allocation22_spill] sm:$0xff] %v2905_v28  ;;  %v2915_v30 = vld [vmem:[%s3564_s8 + $0x48] sm:$0xff]  ;;  %v2920_v31 = vld [vmem:[%s3564_s8 + $0x50] sm:$0xff] }
   0xf   :  { %3607 = vst [vmem:[#allocation23_spill] sm:$0xff] %v2910_v29  ;;  %3608 = vst [vmem:[#allocation24_spill] sm:$0xff] %v2915_v30  ;;  %v2925_v32 = vld [vmem:[%s3564_s8 + $0x58] sm:$0xff]  ;;  %v2930_v33 = vld [vmem:[%s3564_s8 + $0x60] sm:$0xff] }
  0x10   :  { %3609 = vst [vmem:[#allocation25_spill] sm:$0xff] %v2920_v31  ;;  %3610 = vst [vmem:[#allocation26_spill] sm:$0xff] %v2925_v32  ;;  %v2935_v34 = vld [vmem:[%s3564_s8 + $0x68] sm:$0xff]  ;;  %v2940_v35 = vld [vmem:[%s3564_s8 + $0x70] sm:$0xff] }
  0x11   :  { %3611 = vst [vmem:[#allocation27_spill] sm:$0xff] %v2930_v33  ;;  %3612 = vst [vmem:[#allocation28_spill] sm:$0xff] %v2935_v34  ;;  %v2945_v36 = vld [vmem:[%s3564_s8 + $0x78] sm:$0xff]  ;;  %v2950_v37 = vld [vmem:[%s3565_s9] ss:$0 sm:$0xff] }
  0x12   :  { %3613 = vst [vmem:[#allocation29_spill] sm:$0xff] %v2940_v35  ;;  %3614 = vst [vmem:[#allocation30_spill] sm:$0xff] %v2945_v36  ;;  %v2955_v38 = vld [vmem:[%s3566_s10] sm:$0xff]  ;;  %v2960_v39 = vld [vmem:[%s3566_s10 + $0x8] sm:$0xff] }
  0x13   :  { %3615 = vst [vmem:[#allocation31_spill] sm:$0xff] %v2950_v37  ;;  %3616 = vst [vmem:[#allocation32_spill] sm:$0xff] %v2955_v38  ;;  %v2965_v40 = vld [vmem:[%s3566_s10 + $0x10] sm:$0xff]  ;;  %v2970_v41 = vld [vmem:[%s3566_s10 + $0x18] sm:$0xff] }
  0x14   :  { %3617 = vst [vmem:[#allocation33_spill] sm:$0xff] %v2960_v39  ;;  %3618 = vst [vmem:[#allocation34_spill] sm:$0xff] %v2965_v40  ;;  %v2975_v42 = vld [vmem:[%s3566_s10 + $0x20] sm:$0xff]  ;;  %v2980_v43 = vld [vmem:[%s3566_s10 + $0x28] sm:$0xff] }
  0x15   :  { %3619 = vst [vmem:[#allocation35_spill] sm:$0xff] %v2970_v41  ;;  %3620 = vst [vmem:[#allocation36_spill] sm:$0xff] %v2975_v42  ;;  %v2985_v44 = vld [vmem:[%s3566_s10 + $0x30] sm:$0xff]  ;;  %v2990_v45 = vld [vmem:[%s3566_s10 + $0x38] sm:$0xff] }
  0x16   :  { %3621 = vst [vmem:[#allocation37_spill] sm:$0xff] %v2980_v43  ;;  %3622 = vst [vmem:[#allocation38_spill] sm:$0xff] %v2985_v44  ;;  %v2995_v46 = vld [vmem:[%s3566_s10 + $0x40] sm:$0xff]  ;;  %v3000_v47 = vld [vmem:[%s3566_s10 + $0x48] sm:$0xff] }
  0x17   :  { %3623 = vst [vmem:[#allocation39_spill] sm:$0xff] %v2990_v45  ;;  %3624 = vst [vmem:[#allocation40_spill] sm:$0xff] %v2995_v46  ;;  %v3005_v48 = vld [vmem:[%s3566_s10 + $0x50] sm:$0xff]  ;;  %v3010_v49 = vld [vmem:[%s3566_s10 + $0x58] sm:$0xff] }
  0x18   :  { %3625 = vst [vmem:[#allocation41_spill] sm:$0xff] %v3000_v47  ;;  %3626 = vst [vmem:[#allocation42_spill] sm:$0xff] %v3005_v48  ;;  %v3015_v50 = vld [vmem:[%s3567_s11] ss:$0 sm:$0xff]  ;;  %v3025_v52 = vld [vmem:[%s3568_s12 + $0x8] sm:$0xff] }
  0x19   :  { %3627 = vst [vmem:[#allocation43_spill] sm:$0xff] %v3010_v49  ;;  %3628 = vst [vmem:[#allocation44_spill] sm:$0xff] %v3015_v50  ;;  %v3020_v51 = vld [vmem:[%s3568_s12] sm:$0xff]  ;;  %v3030_v53 = vld [vmem:[%s3568_s12 + $0x10] sm:$0xff] }
  0x1a   :  { %3629 = vst [vmem:[#allocation45_spill] sm:$0xff] %v3020_v51  ;;  %3630 = vst [vmem:[#allocation46_spill] sm:$0xff] %v3025_v52  ;;  %v3035_v54 = vld [vmem:[%s3568_s12 + $0x18] sm:$0xff]  ;;  %v3040_v55 = vld [vmem:[%s3568_s12 + $0x20] sm:$0xff] }
  0x1b   :  { %3631 = vst [vmem:[#allocation47_spill] sm:$0xff] %v3030_v53  ;;  %3632 = vst [vmem:[#allocation48_spill] sm:$0xff] %v3035_v54  ;;  %v3045_v56 = vld [vmem:[%s3568_s12 + $0x28] sm:$0xff]  ;;  %v3050_v57 = vld [vmem:[%s3568_s12 + $0x30] sm:$0xff] }
  0x1c   :  { %3633 = vst [vmem:[#allocation49_spill] sm:$0xff] %v3040_v55  ;;  %3634 = vst [vmem:[#allocation50_spill] sm:$0xff] %v3045_v56  ;;  %v3055_v58 = vld [vmem:[%s3568_s12 + $0x38] sm:$0xff]  ;;  %v3060_v59 = vld [vmem:[%s3569_s13] ss:$0 sm:$0xff]  ;;  %s3079_s12 = smov 0  }
  0x1d   :  { %3635 = vst [vmem:[#allocation51_spill] sm:$0xff] %v3050_v57  ;;  %3636 = vst [vmem:[#allocation52_spill] sm:$0xff] %v3055_v58 }
  0x1e   :  { %3637 = vst [vmem:[#allocation53_spill] sm:$0xff] %v3060_v59 }
  0xdb   :  { %v136_v60 = vpop.f32.mrb[0].mxu0 }
  0xdc   :  { %140 = vst.msk [vmem:[#allocation4] sm:$0x3] %vm59_vm3, %v136_v60  ;;  %v2293_v61 = vpop.f32.mrb[1].mxu0 }
  0xe3   :  { %v195_v62 = vld [vmem:[#allocation4] sm:$0x3]  }
  0xe4 LB: > { %v3638_v11 = vld [vmem:[#allocation5_spill] sm:$0xff]  ;;  %v3639_v12 = vld [vmem:[#allocation6_spill] sm:$0xff]  ;;  %v3570_v0 = vmov 0.0|0.0   ;;  %v3640_v13 = vld [vmem:[#allocation7_spill] sm:$0xff]  ;;  %vm2715_vm8 = vmmov 0   ;;  %v3573_v2 = vmov 0.0   ;;  %s2115_s30 = scalar_lea.vmem %s3559_s14, %s2708_s12  ;;  %s2708_s12 = sphi %s3079_s12, %s201_s12   ;;  %v2704_v6 = vphi %v2809_v6, %v3717_v6   ;;  %v2700_v7 = vphi %v2811_v7, %v3716_v7   ;;  %v2696_v8 = vphi %v2813_v8, %v3715_v8   ;;  %v2692_v9 = vphi %v2815_v9, %v3714_v9   ;;  %v2688_v10 = vphi %v194_v10, %v3713_v10   ;;  %v2684_v62 = vphi %v195_v62, %v3712_v62  }
  0xe5   : > { %v2425_v63 = vpack.c.bf16 %v3639_v12, %v3638_v11  ;;  %2424 = vmatprep.subr.bf16.mxu0 %v3570_v0  ;;  %2436 = vmatprep.subr.bf16.mxu1 %v3570_v0  ;;  %v3641_v14 = vld [vmem:[#allocation8_spill] sm:$0xff]  ;;  %v3642_v25 = vld [vmem:[#allocation19_spill] sm:$0xff]  ;;  %s3114_s13 = sshll.u32 %s2708_s12, 1  ;;  %v3644_v27 = vld [vmem:[#allocation21_spill] sm:$0xff]  ;;  %vm225_vm9 = vcmask 588800   ;;  %s2717_s24 = smov 32  }
  0xe6   : > { %v2428_v1 = vpack.c.bf16 %v3641_v14, %v3640_v13  ;;  %2312 = vmatprep.mubr.msk.f32.mxu0 %vm2715_vm8, %v3573_v2  ;;  %v3643_v26 = vld [vmem:[#allocation20_spill] sm:$0xff]  ;;  %2323 = vmatprep.mubr.msk.f32.mxu1 %vm2715_vm8, %v3573_v2  ;;  %v3645_v28 = vld [vmem:[#allocation22_spill] sm:$0xff]  ;;  %s215_s19 = scalar_lea.vmem %s3557_s3, %s3114_s13  ;;  %v3646_v15 = vld [vmem:[#allocation9_spill] sm:$0xff]  ;;  %s213_s22 = scalar_lea.vmem %s3556_s2, %s3114_s13  ;;  %v3572_v13 = vlaneseq  ;;  %vm1918_vm10 = vcmask 523520   ;;  %vm1920_vm11 = vcmask 518400  }
  0xe7   : > { %2426 = vmatpush3.bf16.msra.mxu0 %v2425_v63  ;;  %v2437_v3 = vpack.c.bf16 %v3643_v26, %v3642_v25  ;;  %v2440_v4 = vpack.c.bf16 %v3645_v28, %v3644_v27  ;;  %v3647_v16 = vld [vmem:[#allocation10_spill] sm:$0xff]  ;;  %v3126_v60 = vld [vmem:[%s215_s19] sm:$0x3]  ;;  %v3648_v21 = vld [vmem:[#allocation15_spill] sm:$0xff]  ;;  %s209_s9 = scalar_lea.vmem %s3561_s0, %s3114_s13  ;;  %s2719_s25 = smov 96   ;;  %vm1940_vm12 = vcmask 1041409  }
  0xe8   : > { %2427 = vmatprep.subr.bf16.mxu0 %v3570_v0  ;;  %v2431_v5 = vpack.c.bf16 %v3647_v16, %v3646_v15  ;;  %v3649_v22 = vld [vmem:[#allocation16_spill] sm:$0xff]  ;;  %v3650_v17 = vld [vmem:[#allocation11_spill] sm:$0xff]  ;;  %v3652_v23 = vld [vmem:[#allocation17_spill] sm:$0xff]  ;;  %v3178_v14 = vshrl.u32 %v3572_v13, 7  ;;  %s211_s11 = scalar_lea.vmem %s3555_s1, %s3114_s13  ;;  %s217_s7 = scalar_lea.vmem %s3558_s4, %s3114_s13  ;;  %vm2116_vm13 = vcmask 8192  }
  0xe9   : > { %2438 = vmatpush3.bf16.msra.mxu1 %v2437_v3  ;;  %v2443_v61 = vpack.c.bf16 %v3649_v22, %v3648_v21  ;;  %v3651_v18 = vld [vmem:[#allocation12_spill] sm:$0xff]  ;;  %v3653_v24 = vld [vmem:[#allocation18_spill] sm:$0xff]  ;;  %v3654_v29 = vld [vmem:[#allocation23_spill] sm:$0xff]  ;;  %s201_s12 = sadd.s32 1, %s2708_s12  }
  0xea   : > { %2439 = vmatprep.subr.bf16.mxu1 %v3570_v0  ;;  %v2434_v63 = vpack.c.bf16 %v3651_v18, %v3650_v17  ;;  %v214_v3 = vld [vmem:[%s213_s22] sm:$0x3]  ;;  %v3656_v33 = vld [vmem:[#allocation27_spill] sm:$0xff]  ;;  %v3658_v19 = vld [vmem:[#allocation13_spill] sm:$0xff]  ;;  %3666 = vst [vmem:[#allocation55_spill] sm:$0xff] %v3178_v14  ;;  %p198_p0 = scmp.ge.s32.totalorder %s201_s12, 7  }
  0xeb   : > { %2429 = vmatpush3.bf16.msra.mxu0 %v2428_v1  ;;  %v2446_v1 = vpack.c.bf16 %v3653_v24, %v3652_v23  ;;  %v3655_v30 = vld [vmem:[#allocation24_spill] sm:$0xff]  ;;  %v3659_v31 = vld [vmem:[#allocation25_spill] sm:$0xff]  ;;  %v3660_v32 = vld [vmem:[#allocation26_spill] sm:$0xff] }
  0xec   : > { %2430 = vmatprep.subr.bf16.mxu0 %v3570_v0  ;;  %v3657_v34 = vld [vmem:[#allocation28_spill] sm:$0xff]  ;;  %v3661_v35 = vld [vmem:[#allocation29_spill] sm:$0xff]  ;;  %v3662_v36 = vld [vmem:[#allocation30_spill] sm:$0xff] }
  0xed   : > { %2441 = vmatpush3.bf16.msra.mxu1 %v2440_v4  ;;  %v2449_v4 = vpack.c.bf16 %v3655_v30, %v3654_v29  ;;  %v3663_v20 = vld [vmem:[#allocation14_spill] sm:$0xff]  ;;  %v3668_v37 = vld [vmem:[#allocation31_spill] sm:$0xff]  ;;  %v3669_v46 = vld [vmem:[#allocation40_spill] sm:$0xff] }
  0xee   : > { %2442 = vmatprep.subr.bf16.mxu1 %v3570_v0  ;;  %v3670_v47 = vld [vmem:[#allocation41_spill] sm:$0xff]  ;;  %v3671_v38 = vld [vmem:[#allocation32_spill] sm:$0xff]  ;;  %v3673_v48 = vld [vmem:[#allocation42_spill] sm:$0xff] }
  0xef   : > { %2432 = vmatpush3.bf16.msra.mxu0 %v2431_v5  ;;  %v2455_v5 = vpack.c.bf16 %v3657_v34, %v3656_v33  ;;  %v2467_v17 = vpack.c.bf16 %v3670_v47, %v3669_v46  ;;  %v3672_v39 = vld [vmem:[#allocation33_spill] sm:$0xff]  ;;  %v3674_v49 = vld [vmem:[#allocation43_spill] sm:$0xff]  ;;  %v3675_v40 = vld [vmem:[#allocation34_spill] sm:$0xff] }
  0xf0   : > { %2433 = vmatprep.subr.bf16.mxu0 %v3570_v0  ;;  %2324 = vmatmul.mubr.msk.f32.vlgmr.msra.gmra.mrb[0].mxu1 %vm53_vm0, %v3126_v60  ;;  %v3676_v41 = vld [vmem:[#allocation35_spill] sm:$0xff]  ;;  %v3678_v42 = vld [vmem:[#allocation36_spill] sm:$0xff]  ;;  %v3679_v43 = vld [vmem:[#allocation37_spill] sm:$0xff] }
  0xf1   : > { %2444 = vmatpush3.bf16.msra.mxu1 %v2443_v61  ;;  %2334 = vmatprep.mubr.msk.f32.mxu1 %vm2715_vm8, %v3573_v2  ;;  %v2452_v61 = vpack.c.bf16 %v3660_v32, %v3659_v31  ;;  %v3680_v44 = vld [vmem:[#allocation38_spill] sm:$0xff]  ;;  %v3681_v45 = vld [vmem:[#allocation39_spill] sm:$0xff]  ;;  %v3690_v50 = vld [vmem:[#allocation44_spill] sm:$0xff] }
  0xf2   : > { %2445 = vmatprep.subr.bf16.mxu1 %v3570_v0 }
  0xf3   : > { %2435 = vmatpush3.bf16.msra.mxu0 %v2434_v63 }
  0xf4   : > { %2310 = vmatprep.subr.mxu0 %v3573_v2 }
  0xf5   : > { %2447 = vmatpush3.bf16.msra.mxu1 %v2446_v1 }
  0xf6   : > { %2448 = vmatprep.subr.bf16.mxu1 %v3570_v0 }
  0xf7   : > { %2311 = vmatpush3.msra.mxu0 %v3658_v19 }
  0xf8   : > { %2313 = vmatmul.mubr.msk.f32.vlgmr.msra.gmra.mrb[0].mxu0 %vm225_vm9, %v214_v3  ;;  %2335 = vmatmul.mubr.msk.f32.vlgmr.msra.gmra.mrb[2].mxu1 %vm53_vm0, %v2688_v10  ;;  %v2458_v10 = vpack.c.bf16 %v3662_v36, %v3661_v35 }
  0xf9   : > { %2450 = vmatpush3.bf16.msra.mxu1 %v2449_v4  ;;  %2454 = vmatprep.subr.bf16.mxu0 %v3570_v0 }
  0xfa   : > { %2456 = vmatpush3.bf16.msra.mxu0 %v2455_v5  ;;  %2451 = vmatprep.subr.bf16.mxu1 %v3570_v0 }
  0xfb   : > { %2457 = vmatprep.subr.bf16.mxu0 %v3570_v0  ;;  %2345 = vmatprep.mubr.msk.f32.mxu1 %vm2715_vm8, %v3573_v2 }
  0xfc   : > { %2356 = vmatprep.mubr.msk.f32.mxu0 %vm2715_vm8, %v3573_v2 }
  0xfd   : > { %2453 = vmatpush3.bf16.msra.mxu1 %v2452_v61 }
  0xfe   : > { %2459 = vmatpush3.bf16.msra.mxu0 %v2458_v10  ;;  %2460 = vmatprep.subr.bf16.mxu1 %v3570_v0 }
  0xff   : > { %2466 = vmatprep.subr.bf16.mxu0 %v3570_v0 }
 0x101   : > { %2357 = vmatmul.mubr.msk.f32.vlgmr.msra.gmra.mrb[2].mxu0 %vm53_vm0, %v2684_v62 }
 0x102   : > { %2384 = vmatprep.mubr.msk.f32.mxu0 %vm2715_vm8, %v3573_v2  ;;  %2468 = vmatpush3.bf16.msra.mxu0 %v2467_v17  ;;  %v3682_v17 = vmov 0.0  }
 0x1c3   : > { %v369_v63 = vpop.f32.mrb[0].mxu1 }
 0x1c4   : > { %v2325_v1 = vpop.f32.mrb[1].mxu1 }
 0x1c5   : > { %v3575_v1 = vsub.s32 1, %v3178_v14 }
 0x1cb   : > { %v295_v3 = vpop.f32.mrb[0].mxu0  ;;  %v442_v4 = vpop.f32.mrb[2].mxu1 }
 0x1cc   : > { %v3171_v10 = vadd.f32 %v3663_v20, %v295_v3   ;;  %v2314_v61 = vpop.f32.mrb[1].mxu0  ;;  %v443_v11 = vadd.f32 %v442_v4, %v369_v63  ;;  %v2336_v12 = vpop.f32.mrb[3].mxu1 }
 0x1cd   : > { %v210_v12 = vld [vmem:[%s209_s9] sm:$0x3] }
 0x1ce   : > { %3664 = vst [vmem:[#allocation54_spill] sm:$0xff] %v3171_v10  ;;  %v3665_v5 = vmov %v3171_v10  ;;  %v3185_v10 = vsub.s32 0, %v3178_v14 }
 0x1cf   : > { %2346 = vmatmul.mubr.msk.f32.vlgmr.msra.gmra.mrb[4].mxu1 %vm53_vm0, %v3665_v5 }
 0x1d0   : > { %2367 = vmatprep.mubr.msk.f32.mxu1 %vm2715_vm8, %v3573_v2  ;;  %3667 = vst [vmem:[#allocation56_spill] sm:$0xff] %v3185_v10  ;;  %v618_v63 = vrot.slane %v210_v12, %v3185_v10 }
 0x1d2   : > { %620 = vbcast.lane.b32.xlu1 %v618_v63, 256 }
 0x1d4   : > { %v589_v62 = vpop.f32.mrb[2].mxu0 }
 0x1d5   : > { %v2358_v0 = vpop.f32.mrb[3].mxu0 }
 0x1d6   : > { %624 = vbcast.lane.b32.xlu1 %v618_v63, 264  ;;  %v3191_v0 = vrot.slane %v210_v12, %v3575_v1  ;;  %v2461_v63 = vpack.c.bf16 %v3672_v39, %v3671_v38 }
 0x1d8   : > { %2462 = vmatpush3.bf16.msra.mxu1 %v2461_v63 }
 0x1da   : > { %635 = vbcast.lane.b32.xlu1 %v3191_v0, 264 }
 0x2a2   : > { %v515_v3 = vpop.f32.mrb[4].mxu1 }
 0x2a3   : > { %v519_v4 = vadd.f32 %v515_v3, %v443_v11  ;;  %v2347_v61 = vpop.f32.mrb[5].mxu1  ;;  %v2470_v11 = vpack.c.bf16 %v3674_v49, %v3673_v48  ;;  %v2718_v3 = vmov 1966171168  }
 0x2a5   : > { %v593_v13 = vadd.f32 %v589_v62, %v519_v4  ;;  %v3677_v62 = vmov 0.0|0.0   ;;  %v639_v4 = vunpack.c.l.s4 %v2718_v3 }
 0x2a6   : > { %2469 = vmatprep.subr.bf16.mxu0 %v3677_v62  ;;  %2463 = vmatprep.subr.bf16.mxu1 %v3677_v62 }
 0x2a7   : > { %v600_v2 = vadd.f32 %v3668_v37, %v593_v13  ;;  %v2464_v13 = vpack.c.bf16 %v3676_v41, %v3675_v40  ;;  %2471 = vmatpush3.bf16.msra.mxu0 %v2470_v11  ;;  %v640_v61 = vunpack.c.0.s8 %v639_v4  ;;  %v678_v11 = vcombine.high %v2704_v6, %v2704_v6 }
 0x2a8   : > { %2472 = vmatprep.subr.bf16.mxu0 %v3677_v62 }
 0x2a9   : > { %2556 = vtanh.f32 %v600_v2  ;;  %2465 = vmatpush3.bf16.msra.mxu1 %v2464_v13  ;;  %v2192_v12 = vmul.f32 -1.442695, %v600_v2 }
 0x2aa   : > { %2478 = vmatprep.subr.bf16.mxu1 %v3677_v62  ;;  %2385 = vmatmul.mubr.msk.f32.vlgmr.msra.gmra.mrb[4].mxu0 %vm53_vm0, %v3126_v60  ;;  %v3219_v60 = vsub.s32 %v640_v61, %v3178_v14 }
 0x2ab   : > { %2395 = vmatprep.mubr.msk.f32.mxu0 %vm2715_vm8, %v3682_v17  ;;  %2558 = vpow2.f32 %v2192_v12 }
 0x2ac   : > { %v685_v13 = vrot.slane %v2704_v6, %v3219_v60  ;;  %v757_v2 = vrot.slane %v2696_v8, %v3219_v60  ;;  %v733_v6 = vrot.slane %v2700_v7, %v3219_v60 }
 0x2ae   : > { %v693_v1 = vcombine.high %v685_v13, %v685_v13  ;;  %v3229_v12 = vrot.slane %v685_v13, %v3219_v60  ;;  %v3253_v19 = vrot.slane %v733_v6, %v3219_v60 }
 0x2b0   : > { %v3235_v4 = vrot.slane %v693_v1, %v3219_v60 }
 0x2b2   : > { %v822_v13 = vcombine.low %v3229_v12, %v3235_v4 }
 0x2b3   : > { %v2557_v15 = vpop.eup %2556 }
 0x2b4   : > { %v608_v16 = vadd.f32 1.0, %v2557_v15  ;;  %v2473_v15 = vpack.c.bf16 %v3679_v43, %v3678_v42  ;;  %v832_v20 = vrot.slane %v822_v13, %v3219_v60 }
 0x2b5   : > { %v2559_v63 = vpop.eup %2558 }
 0x2b6   : > { %610 = vrot.lane.b32.xlu0 %v608_v16, %s2717_s24  ;;  %2474 = vmatpush3.bf16.msra.mxu0 %v2473_v15  ;;  %v2476_v16 = vpack.c.bf16 %v3681_v45, %v3680_v44  ;;  %v692_v15 = vrot.slane %v678_v11, %v3219_v60  ;;  %v765_v11 = vcombine.high %v757_v2, %v757_v2 }
 0x2b7   : > { %2475 = vmatprep.subr.bf16.mxu0 %v3677_v62 }
 0x2b8   : > { %v694_v18 = vcombine.high %v692_v15, %v692_v15  ;;  %v3232_v3 = vrot.slane %v692_v15, %v3219_v60  ;;  %v2193_v15 = vcombine.high %v3229_v12, %v3235_v4 }
 0x2ba   : > { %2477 = vmatpush3.bf16.msra.mxu0 %v2476_v16  ;;  %v605_v16 = vadd.f32 1.0, %v2559_v63  ;;  %v3238_v61 = vrot.slane %v694_v18, %v3219_v60  ;;  %v750_v63 = vcombine.high %v2696_v8, %v2696_v8  ;;  %v3257_v8 = vrot.slane %v757_v2, %v3219_v60 }
 0x2bb   : > { %2484 = vmatprep.subr.bf16.mxu0 %v3677_v62  ;;  %v839_v21 = vrot.slane %v2193_v15, %v3219_v60  ;;  %v3274_v2 = vrot.slane %v765_v11, %v3219_v60 }
 0x2bc   : > { %2560 = vrcp.f32 %v605_v16  ;;  %v824_v1 = vcombine.low %v3232_v3, %v3238_v61  ;;  %v2194_v18 = vcombine.high %v3232_v3, %v3238_v61  ;;  %v734_v16 = vcombine.high %v733_v6, %v733_v6 }
 0x2bd   : > { %v764_v7 = vrot.slane %v750_v63, %v3219_v60  ;;  %v3268_v6 = vcombine.high %v3253_v19, %v3253_v19  ;;  %v854_v13 = vcombine.low %v832_v20, %v839_v21  ;;  %v3278_v15 = vcombine.high %v3257_v8, %v3257_v8 }
 0x2be   : > { %v846_v22 = vrot.slane %v824_v1, %v3219_v60  ;;  %v853_v23 = vrot.slane %v2194_v18, %v3219_v60  ;;  %v3264_v24 = vrot.slane %v734_v16, %v3219_v60  ;;  %v3282_v1 = vcombine.high %v3274_v2, %v3274_v2 }
 0x2bf   : > { %v3271_v63 = vrot.slane %v764_v7, %v3219_v60  ;;  %v872_v16 = vcombine.low %v3268_v6, %v3257_v8  ;;  %v862_v26 = vrot.slane %v854_v13, %v3219_v60  ;;  %v873_v20 = vcombine.low %v3274_v2, %v3278_v15 }
 0x2c0   : > { %v855_v25 = vcombine.low %v846_v22, %v853_v23  ;;  %v871_v18 = vcombine.low %v3253_v19, %v3264_v24  ;;  %v766_v21 = vcombine.high %v764_v7, %v764_v7  ;;  %v805_v7 = vrot.slane %v2692_v9, %v3219_v60 }
 0x2c1   : > { %v874_v22 = vcombine.low %v3282_v1, %v3271_v63  ;;  %v888_v27 = vrot.slane %v872_v16, %v3219_v60  ;;  %v3298_v28 = vcombine.high %v3271_v63, %v3271_v63  ;;  %v895_v13 = vrot.slane %v873_v20, %v3219_v60 }
 0x2c2   : > { %v869_v11 = vrot.slane %v855_v25, %v3219_v60  ;;  %v881_v23 = vrot.slane %v871_v18, %v3219_v60  ;;  %v3302_v25 = vrot.slane %v766_v21, %v3219_v60  ;;  %v806_v16 = vcombine.high %v805_v7, %v805_v7 }
 0x2c3   : > { %3683 = vst [vmem:[#allocation57_spill] sm:$0xff] %v3298_v28  ;;  %v902_v31 = vrot.slane %v874_v22, %v3219_v60 }
 0x2c4   : > { %v870_v29 = vcombine.low %v862_v26, %v869_v11  ;;  %v903_v32 = vcombine.low %v881_v23, %v888_v27  ;;  %v3310_v18 = vcombine.high %v3302_v25, %v3302_v25  ;;  %v3313_v26 = vrot.slane %v805_v7, %v3219_v60 }
 0x2c5   : > { %v920_v11 = vcombine.low %v3302_v25, %v3298_v28  ;;  %v904_v9 = vcombine.low %v895_v13, %v902_v31  ;;  %v3321_v27 = vrot.slane %v806_v16, %v3219_v60 }
 0x2c6   : > { %v2561_v30 = vpop.eup %2560  ;;  %2368 = vmatmul.mubr.msk.f32.vlgmr.msra.gmra.mrb[6].mxu1 %vm53_vm0, %v870_v29  ;;  %3684 = vst [vmem:[#allocation58_spill] sm:$0xff] %v3310_v18  ;;  %3685 = vst [vmem:[#allocation59_spill] sm:$0xff] %v3313_v26  ;;  %v911_v20 = vrot.slane %v903_v32, %v3219_v60  ;;  %v3325_v29 = vcombine.high %v3313_v26, %v3313_v26  ;;  %v921_v21 = vcombine.low %v3310_v18, %v3313_v26 }
 0x2c7   : > { %2370 = vmatprep.mubr.msk.f32.mxu1 %vm2715_vm8, %v3682_v17  ;;  %3686 = vst [vmem:[#allocation60_spill] sm:$0xff] %v3321_v27  ;;  %v929_v22 = vrot.slane %v920_v11, %v3219_v60  ;;  %v918_v23 = vrot.slane %v904_v9, %v3219_v60 }
 0x2c8   : > { %3687 = vst [vmem:[#allocation61_spill] sm:$0xff] %v3325_v29  ;;  %v922_v7 = vcombine.low %v3321_v27, %v3325_v29  ;;  %v936_v31 = vrot.slane %v921_v21, %v3219_v60 }
 0x2c9   : > { %v919_v32 = vcombine.low %v911_v20, %v918_v23 }
 0x2ca   : > { %v943_v13 = vrot.slane %v922_v7, %v3219_v60  ;;  %v944_v16 = vcombine.low %v929_v22, %v936_v31  ;;  %v3355_v31 = vld [vmem:[%s211_s11] sm:$0x3] }
 0x2cb   : > { %2371 = vmatmul.mubr.msk.f32.gmra.mrb[8].mxu1 %vm53_vm0, %v919_v32  ;;  %3689 = vst [vmem:[#allocation63_spill] sm:$0xff] %v3355_v31 }
 0x2cc   : > { %2373 = vmatprep.mubr.msk.f32.mxu1 %vm2715_vm8, %v3682_v17  ;;  %v951_v34 = vrot.slane %v944_v16, %v3219_v60  ;;  %v958_v11 = vrot.slane %v943_v13, %v3219_v60 }
 0x2ce   : > { %v959_v35 = vcombine.low %v951_v34, %v958_v11 }
 0x2d0   : > { %2374 = vmatmul.mubr.msk.f32.gmra.mrb[10].mxu1 %vm53_vm0, %v959_v35 }
 0x2d1   : > { %2406 = vmatprep.mubr.msk.f32.mxu1 %vm2715_vm8, %v3682_v17 }
 0x328   : > { %v611_v33 = vpop.permute.xlu0 %610 }
 0x329   : > { %v613_v9 = vmul.f32 %v2561_v30, %v611_v33 }
 0x32b   : > { %v3340_v36 = vmul.f32 0.5, %v613_v9 }
 0x32d   : > { %3688 = vst [vmem:[#allocation62_spill] sm:$0xff] %v3340_v36  ;;  %1286 = vrot.lane.b32.xlu0 %v3340_v36, %s2719_s25 }
 0x331   : > { %631 = vbcast.lane.b32.xlu0 %v3191_v0, 256  ;;  %v1895_v0 = vrot.slane %v3355_v31, %v3185_v10 }
 0x333   : > { %1901 = vbcast.lane.b32.xlu1 %v1895_v0, 264 }
 0x335   : > { %1897 = vbcast.lane.b32.xlu0 %v1895_v0, 256 }
 0x37d   : > { %v1282_v20 = vpop.f32.mrb[4].mxu0 }
 0x37e   : > { %v2386_v21 = vpop.f32.mrb[5].mxu0 }
 0x399   : > { %v1032_v30 = vpop.f32.mrb[6].mxu1 }
 0x39a   : > { %v2369_v33 = vpop.f32.mrb[7].mxu1  ;;  %v1049_v32 = vcombine.high %v1032_v30, %v1032_v30 }
 0x39c   : > { %v1063_v16 = vrot.slane %v1049_v32, %v3219_v60 }
 0x39e   : > { %v1037_v34 = vpop.f32.mrb[8].mxu1  ;;  %v1065_v38 = vcombine.high %v1063_v16, %v1063_v16 }
 0x39f   : > { %v1287_v22 = vpop.permute.xlu0 %1286  ;;  %v2372_v35 = vpop.f32.mrb[9].mxu1  ;;  %v1098_v13 = vcombine.high %v1037_v34, %v1037_v34  ;;  %v1105_v9 = vrot.slane %v1037_v34, %v3219_v60  ;;  %v1079_v34 = vrot.slane %v1063_v16, %v3219_v60 }
 0x3a0   : > { %2396 = vmatmul.mubr.msk.f32.vlgmr.msra.gmra.mrb[6].mxu0 %vm53_vm0, %v1287_v22 }
 0x3a1   : > { %2417 = vmatprep.mubr.msk.f32.mxu0 %vm2715_vm8, %v3682_v17  ;;  %v1056_v17 = vrot.slane %v1032_v30, %v3219_v60  ;;  %v1112_v21 = vrot.slane %v1098_v13, %v3219_v60  ;;  %v1113_v39 = vcombine.high %v1105_v9, %v1105_v9  ;;  %v3379_v41 = vrot.slane %v1105_v9, %v3219_v60 }
 0x3a3   : > { %v1042_v23 = vpop.f32.mrb[10].mxu1  ;;  %v1064_v35 = vcombine.high %v1056_v17, %v1056_v17  ;;  %v1114_v40 = vcombine.high %v1112_v21, %v1112_v21  ;;  %v1072_v32 = vrot.slane %v1056_v17, %v3219_v60  ;;  %v3382_v17 = vrot.slane %v1112_v21, %v3219_v60 }
 0x3a4   : > { %v2375_v7 = vpop.f32.mrb[11].mxu1  ;;  %v3364_v37 = vrot.slane %v1042_v23, %v3219_v60  ;;  %v3385_v16 = vrot.slane %v1113_v39, %v3219_v60 }
 0x3a5   : > { %v1147_v7 = vcombine.high %v1042_v23, %v1042_v23  ;;  %v1086_v13 = vrot.slane %v1064_v35, %v3219_v60  ;;  %v3388_v35 = vrot.slane %v1114_v40, %v3219_v60  ;;  %v1094_v42 = vcombine.high %v1072_v32, %v1072_v32 }
 0x3a6   : > { %v1162_v23 = vcombine.high %v3364_v37, %v3364_v37  ;;  %v1145_v45 = vcombine.high %v3385_v16, %v3385_v16 }
 0x3a7   : > { %v1096_v43 = vcombine.high %v1086_v13, %v1086_v13  ;;  %v1146_v46 = vcombine.high %v3388_v35, %v3388_v35 }
 0x3a8   : > { %v3395_v9 = vrot.slane %v1162_v23, %v3219_v60 }
 0x3aa   : > { %v1193_v5 = vcombine.high %v3395_v9, %v3395_v9 }
 0x473   : > { %v1356_v11 = vpop.f32.mrb[6].mxu0 }
 0x474   : > { %v1357_v22 = vadd.f32 %v1356_v11, %v1282_v20  ;;  %v2397_v33 = vpop.f32.mrb[7].mxu0  ;;  %v3372_v20 = vrot.slane %v1147_v7, %v3219_v60 }
 0x475   : > { %v1093_v33 = vrot.slane %v1065_v38, %v3219_v60 }
 0x476   : > { %v1366_v0 = vadd.f32 %v3690_v50, %v1357_v22  ;;  %v1163_v38 = vcombine.high %v3372_v20, %v3372_v20  ;;  %v1177_v49 = vrot.slane %v3372_v20, %v3219_v60 }
 0x477   : > { %v1097_v40 = vcombine.high %v1093_v33, %v1093_v33 }
 0x478   : > { %v1374_v30 = vrot.slane %v1366_v0, %v3219_v60  ;;  %v3413_v50 = vrot.slane %v1163_v38, %v3219_v60 }
 0x47a   : > { %v1375_v11 = vcombine.high %v1374_v30, %v1374_v30  ;;  %v1382_v22 = vrot.slane %v1374_v30, %v3219_v60  ;;  %v1095_v30 = vcombine.high %v1079_v34, %v1079_v34 }
 0x47c   : > { %v1389_v7 = vrot.slane %v1375_v11, %v3219_v60  ;;  %v1393_v0 = vrot.slane %v1382_v22, %v3185_v10  ;;  %v1143_v11 = vcombine.high %v3379_v41, %v3379_v41  ;;  %v1144_v22 = vcombine.high %v3382_v17, %v3382_v17 }
 0x47e   : > { %v1397_v21 = vrot.slane %v1389_v7, %v3185_v10  ;;  %v1398_v39 = vcombine.high %v1393_v0, %v1393_v0  ;;  %v1405_v44 = vrot.slane %v1393_v0, %v3219_v60 }
 0x480   : > { %v1412_v23 = vrot.slane %v1398_v39, %v3219_v60  ;;  %v1413_v47 = vcombine.high %v1405_v44, %v1405_v44  ;;  %v1447_v7 = vcombine.high %v1397_v21, %v1397_v21  ;;  %v1454_v48 = vrot.slane %v1397_v21, %v3219_v60 }
 0x481   : > { %v1421_v0 = vrot.slane %v1405_v44, %v3219_v60 }
 0x482   : > { %v1414_v59 = vcombine.high %v1412_v23, %v1412_v23  ;;  %v1461_v10 = vrot.slane %v1447_v7, %v3219_v60  ;;  %v1462_v36 = vcombine.high %v1454_v48, %v1454_v48  ;;  %v1470_v39 = vrot.slane %v1454_v48, %v3219_v60 }
 0x483   : > { %v1428_v62 = vrot.slane %v1412_v23, %v3219_v60  ;;  %v1435_v21 = vrot.slane %v1413_v47, %v3219_v60  ;;  %v1443_v44 = vcombine.high %v1421_v0, %v1421_v0  ;;  %v1512_v54 = vadd.f32 %v1421_v0, %v1072_v32 }
 0x484   : > { %v1442_v20 = vrot.slane %v1414_v59, %v3219_v60  ;;  %v1477_v38 = vrot.slane %v1461_v10, %v3219_v60  ;;  %v1484_v53 = vrot.slane %v1462_v36, %v3219_v60  ;;  %v1492_v58 = vcombine.high %v1470_v39, %v1470_v39 }
 0x485   : > { %v1444_v57 = vcombine.high %v1428_v62, %v1428_v62  ;;  %v1445_v52 = vcombine.high %v1435_v21, %v1435_v21  ;;  %v1513_v51 = vadd.f32 %v1435_v21, %v1086_v13  ;;  %v1514_v7 = vadd.f32 %v1443_v44, %v1094_v42 }
 0x486   : > { %v1446_v56 = vcombine.high %v1442_v20, %v1442_v20  ;;  %v1516_v55 = vadd.f32 %v1428_v62, %v1079_v34  ;;  %v1517_v48 = vadd.f32 %v1442_v20, %v1093_v33  ;;  %v2201_v31 = vmul.f32 -1.442695, %v1512_v54 }
 0x487   : > { %v1515_v23 = vadd.f32 %v1445_v52, %v1096_v43  ;;  %v1518_v14 = vadd.f32 %v1444_v57, %v1095_v30  ;;  %v2202_v47 = vmul.f32 -1.442695, %v1513_v51  ;;  %v2203_v29 = vmul.f32 -1.442695, %v1514_v7 }
 0x488   : > { %v1519_v32 = vadd.f32 %v1446_v56, %v1097_v40  ;;  %2562 = vpow2.f32 %v2201_v31  ;;  %v2205_v59 = vmul.f32 -1.442695, %v1516_v55  ;;  %v2206_v27 = vmul.f32 -1.442695, %v1517_v48 }
 0x489   : > { %2564 = vpow2.f32 %v2202_v47  ;;  %v2204_v26 = vmul.f32 -1.442695, %v1515_v23  ;;  %v2207_v36 = vmul.f32 -1.442695, %v1518_v14  ;;  %v1494_v18 = vcombine.high %v1484_v53, %v1484_v53 }
 0x48a   : > { %2566 = vpow2.f32 %v2203_v29  ;;  %v2208_v28 = vmul.f32 -1.442695, %v1519_v32  ;;  %v1520_v42 = vadd.f32 %v1421_v0, %v3379_v41  ;;  %v1521_v62 = vadd.f32 %v1435_v21, %v3385_v16 }
 0x48b   : > { %2568 = vpow2.f32 %v2204_v26  ;;  %v1522_v54 = vadd.f32 %v1443_v44, %v1143_v11  ;;  %v1523_v43 = vadd.f32 %v1470_v39, %v1145_v45  ;;  %v1524_v51 = vadd.f32 %v1484_v53, %v3382_v17 }
 0x48c   : > { %2570 = vpow2.f32 %v2205_v59  ;;  %v1525_v52 = vadd.f32 %v1492_v58, %v3388_v35  ;;  %v1526_v55 = vadd.f32 %v1494_v18, %v1144_v22  ;;  %v1527_v56 = vadd.f32 %v1477_v38, %v1146_v46 }
 0x48d   : > { %2572 = vpow2.f32 %v2206_v27  ;;  %v2209_v57 = vmul.f32 -1.442695, %v1520_v42  ;;  %v2210_v14 = vmul.f32 -1.442695, %v1521_v62  ;;  %v1170_v29 = vrot.slane %v3364_v37, %v3219_v60 }
 0x48e   : > { %2574 = vpow2.f32 %v2207_v36  ;;  %v2211_v41 = vmul.f32 -1.442695, %v1522_v54  ;;  %v2212_v31 = vmul.f32 -1.442695, %v1523_v43  ;;  %v2213_v26 = vmul.f32 -1.442695, %v1524_v51 }
 0x48f   : > { %2576 = vpow2.f32 %v2208_v28  ;;  %v1463_v34 = vcombine.high %v1461_v10, %v1461_v10  ;;  %v1493_v45 = vcombine.high %v1477_v38, %v1477_v38  ;;  %v3430_v13 = vadd.f32 %v1470_v39, %v1193_v5 }
 0x490   : > { %2578 = vpow2.f32 %v2209_v57  ;;  %v3432_v33 = vadd.f32 %v1484_v53, %v1177_v49  ;;  %v1192_v46 = vcombine.high %v1170_v29, %v1170_v29  ;;  %v3436_v27 = vadd.f32 %v1492_v58, %v3413_v50 }
 0x491   : > { %2580 = vpow2.f32 %v2210_v14  ;;  %v1491_v18 = vrot.slane %v1463_v34, %v3219_v60  ;;  %v1529_v28 = vadd.f32 %v1493_v45, %v3395_v9  ;;  %v2214_v44 = vmul.f32 -1.442695, %v1525_v52 }
 0x492   : > { %v2563_v37 = vpop.eup %2562  ;;  %2582 = vpow2.f32 %v2211_v41  ;;  %v2215_v7 = vmul.f32 -1.442695, %v1526_v55  ;;  %v2216_v23 = vmul.f32 -1.442695, %v1527_v56  ;;  %v723_v51 = vcombine.high %v3229_v12, %v3229_v12 }
 0x493   : > { %v2565_v17 = vpop.eup %2564  ;;  %v1600_v16 = vadd.f32 1.0, %v2563_v37  ;;  %2584 = vpow2.f32 %v2212_v31  ;;  %v1495_v10 = vcombine.high %v1491_v18, %v1491_v18  ;;  %v1528_v35 = vadd.f32 %v1491_v18, %v1170_v29 }
 0x494   : > { %v2567_v5 = vpop.eup %2566  ;;  %v1601_v30 = vadd.f32 1.0, %v2565_v17  ;;  %2586 = vpow2.f32 %v2213_v26  ;;  %v725_v52 = vcombine.high %v3235_v4, %v3235_v4  ;;  %v724_v57 = vcombine.high %v3232_v3, %v3232_v3 }
 0x495   : > { %v2569_v49 = vpop.eup %2568  ;;  %v1602_v53 = vadd.f32 1.0, %v2567_v5  ;;  %2588 = vrcp.f32 %v1600_v16  ;;  %v1530_v40 = vadd.f32 %v1495_v10, %v1192_v46  ;;  %v2217_v29 = vmul.f32 -1.442695, %v1528_v35 }
 0x496   : > { %v2571_v11 = vpop.eup %2570  ;;  %v1603_v22 = vadd.f32 1.0, %v2569_v49  ;;  %2590 = vrcp.f32 %v1601_v30  ;;  %v2218_v34 = vmul.f32 -1.442695, %v1529_v28  ;;  %v726_v46 = vcombine.high %v3238_v61, %v3238_v61 }
 0x497   : > { %v2573_v50 = vpop.eup %2572  ;;  %v1604_v58 = vadd.f32 1.0, %v2571_v11  ;;  %2592 = vrcp.f32 %v1602_v53  ;;  %v2219_v45 = vmul.f32 -1.442695, %v1530_v40  ;;  %v2220_v35 = vmul.f32 -1.442695, %v3430_v13 }
 0x498   : > { %v2575_v0 = vpop.eup %2574  ;;  %v1605_v9 = vadd.f32 1.0, %v2573_v50  ;;  %2594 = vrcp.f32 %v1603_v22 }
 0x499   : > { %v2577_v39 = vpop.eup %2576  ;;  %v1606_v21 = vadd.f32 1.0, %v2575_v0  ;;  %2596 = vrcp.f32 %v1604_v58 }
 0x49a   : > { %v2579_v20 = vpop.eup %2578  ;;  %v1607_v38 = vadd.f32 1.0, %v2577_v39  ;;  %2598 = vrcp.f32 %v1605_v9 }
 0x49b   : > { %v2581_v48 = vpop.eup %2580  ;;  %2600 = vrcp.f32 %v1606_v21  ;;  %v1608_v32 = vadd.f32 1.0, %v2579_v20 }
 0x49c   : > { %v2583_v47 = vpop.eup %2582  ;;  %2602 = vrcp.f32 %v1607_v38  ;;  %v1609_v36 = vadd.f32 1.0, %v2581_v48 }
 0x49d   : > { %v2585_v59 = vpop.eup %2584  ;;  %2604 = vpow2.f32 %v2214_v44  ;;  %v1610_v62 = vadd.f32 1.0, %v2583_v47 }
 0x49e   : > { %v2587_v42 = vpop.eup %2586  ;;  %2606 = vpow2.f32 %v2215_v7  ;;  %v1611_v43 = vadd.f32 1.0, %v2585_v59 }
 0x49f   : > { %v2589_v54 = vpop.eup %2588  ;;  %2608 = vpow2.f32 %v2216_v23  ;;  %v1612_v56 = vadd.f32 1.0, %v2587_v42 }
 0x4a0   : > { %v2591_v55 = vpop.eup %2590  ;;  %2610 = vrcp.f32 %v1608_v32  ;;  %v1688_v41 = vmul.f32 %v2589_v54, %v3229_v12  ;;  %v2221_v12 = vmul.f32 -1.442695, %v3432_v33 }
 0x4a1   : > { %v2593_v14 = vpop.eup %2592  ;;  %2612 = vrcp.f32 %v1609_v36  ;;  %v1689_v31 = vmul.f32 %v2591_v55, %v3235_v4 }
 0x4a2   : > { %v2595_v26 = vpop.eup %2594  ;;  %2614 = vrcp.f32 %v1610_v62  ;;  %v1690_v37 = vmul.f32 %v2593_v14, %v723_v51 }
 0x4a3   : > { %v2597_v18 = vpop.eup %2596  ;;  %2616 = vrcp.f32 %v1611_v43  ;;  %v1691_v17 = vmul.f32 %v2595_v26, %v725_v52  ;;  %v1732_v16 = vcombine.low %v1688_v41, %v1689_v31 }
 0x4a4   : > { %v2599_v10 = vpop.eup %2598  ;;  %2618 = vrcp.f32 %v1612_v56  ;;  %v1692_v4 = vmul.f32 %v2597_v18, %v3232_v3  ;;  %v2222_v3 = vmul.f32 -1.442695, %v3436_v27 }
 0x4a5   : > { %v2601_v5 = vpop.eup %2600  ;;  %2620 = vpow2.f32 %v2217_v29  ;;  %v1693_v28 = vmul.f32 %v2599_v10, %v3238_v61  ;;  %v1733_v30 = vcombine.low %v1690_v37, %v1691_v17  ;;  %v1742_v33 = vrot.slane %v1732_v16, %v3219_v60 }
 0x4a6   : > { %v2603_v49 = vpop.eup %2602  ;;  %2622 = vpow2.f32 %v2218_v34  ;;  %v1694_v53 = vmul.f32 %v2601_v5, %v724_v57 }
 0x4a7   : > { %v2605_v40 = vpop.eup %2604  ;;  %2624 = vpow2.f32 %v2219_v45  ;;  %v1695_v11 = vmul.f32 %v2603_v49, %v726_v46  ;;  %v1734_v22 = vcombine.low %v1692_v4, %v1693_v28  ;;  %v1749_v50 = vrot.slane %v1733_v30, %v3219_v60 }
 0x4a8   : > { %v2607_v58 = vpop.eup %2606  ;;  %v1613_v13 = vadd.f32 1.0, %v2605_v40  ;;  %2626 = vpow2.f32 %v2220_v35 }
 0x4a9   : > { %v2609_v0 = vpop.eup %2608  ;;  %v1614_v9 = vadd.f32 1.0, %v2607_v58  ;;  %2628 = vpow2.f32 %v2221_v12  ;;  %v1735_v61 = vcombine.low %v1694_v53, %v1695_v11  ;;  %v1764_v21 = vcombine.low %v1742_v33, %v1749_v50  ;;  %v3692_v50 = vld [vmem:[#allocation58_spill] sm:$0xff] }
 0x4aa   : > { %v2611_v39 = vpop.eup %2610  ;;  %2630 = vrcp.f32 %v1613_v13  ;;  %v1756_v20 = vrot.slane %v1734_v22, %v3219_v60  ;;  %v1615_v48 = vadd.f32 1.0, %v2609_v0  ;;  %v3691_v22 = vld [vmem:[#allocation57_spill] sm:$0xff]  ;;  %v3693_v0 = vld [vmem:[#allocation59_spill] sm:$0xff] }
 0x4ab   : > { %v2613_v44 = vpop.eup %2612  ;;  %2632 = vrcp.f32 %v1614_v9  ;;  %v1763_v38 = vrot.slane %v1735_v61, %v3219_v60  ;;  %v1696_v23 = vmul.f32 %v2611_v39, %v3253_v19  ;;  %v1772_v54 = vrot.slane %v1764_v21, %v3219_v60 }
 0x4ac   : > { %v2615_v7 = vpop.eup %2614  ;;  %v1697_v47 = vmul.f32 %v2613_v44, %v3264_v24  ;;  %2634 = vpow2.f32 %v2222_v3  ;;  %v3694_v3 = vld [vmem:[#allocation60_spill] sm:$0xff] }
 0x4ad   : > { %v2617_v32 = vpop.eup %2616  ;;  %v1698_v27 = vmul.f32 %v2615_v7, %v3268_v6  ;;  %v1765_v59 = vcombine.low %v1756_v20, %v1763_v38  ;;  %2636 = vrcp.f32 %v1615_v48 }
 0x4ae   : > { %v2619_v36 = vpop.eup %2618  ;;  %v1781_v42 = vcombine.low %v1696_v23, %v1697_v47  ;;  %v1699_v51 = vmul.f32 %v2617_v32, %v3257_v8 }
 0x4af   : > { %v2621_v62 = vpop.eup %2620  ;;  %v1779_v43 = vrot.slane %v1765_v59, %v3219_v60  ;;  %v1700_v52 = vmul.f32 %v2619_v36, %v3274_v2  ;;  %v1795_v56 = vrot.slane %v1698_v27, %v3219_v60 }
 0x4b0   : > { %v2623_v55 = vpop.eup %2622  ;;  %v1616_v19 = vadd.f32 1.0, %v2621_v62  ;;  %v1788_v24 = vrot.slane %v1781_v42, %v3219_v60  ;;  %v3696_v42 = vld [vmem:[#allocation55_spill] sm:$0xff] }
 0x4b1   : > { %v2625_v6 = vpop.eup %2624  ;;  %v1617_v57 = vadd.f32 1.0, %v2623_v55  ;;  %v1780_v14 = vcombine.low %v1772_v54, %v1779_v43  ;;  %v1804_v29 = vcombine.low %v1699_v51, %v1700_v52  ;;  %v3697_v62 = vsub.s32 1, %v3696_v42  ;;  %v3698_v54 = vld [vmem:[#allocation63_spill] sm:$0xff]  ;;  %v3699_v51 = vld [vmem:[#allocation49_spill] sm:$0xff]  ;;  %v3700_v52 = vld [vmem:[#allocation50_spill] sm:$0xff] }
 0x4b2   : > { %v2627_v41 = vpop.eup %2626  ;;  %v1618_v31 = vadd.f32 1.0, %v2625_v6  ;;  %2638 = vrcp.f32 %v1616_v19  ;;  %v1796_v26 = vcombine.low %v1788_v24, %v1795_v56  ;;  %v2479_v55 = vpack.c.bf16 %v3700_v52, %v3699_v51  ;;  %v3701_v19 = vld [vmem:[#allocation45_spill] sm:$0xff]  ;;  %v3702_v24 = vld [vmem:[#allocation46_spill] sm:$0xff]  ;;  %v3703_v6 = vld [vmem:[#allocation51_spill] sm:$0xff] }
 0x4b3   : > { %v2629_v34 = vpop.eup %2628  ;;  %v1619_v45 = vadd.f32 1.0, %v2627_v41  ;;  %2640 = vrcp.f32 %v1617_v57  ;;  %1876 = vrot.lane.b32.xlu0 %v1780_v14, %s2717_s24  ;;  %v1814_v5 = vrot.slane %v1804_v29, %v3219_v60  ;;  %v1906_v43 = vrot.slane %v3698_v54, %v3697_v62  ;;  %v3704_v57 = vld [vmem:[#allocation52_spill] sm:$0xff]  ;;  %v3705_v29 = vld [vmem:[#allocation47_spill] sm:$0xff] }
 0x4b4   : > { %v2631_v8 = vpop.eup %2630  ;;  %v1620_v2 = vadd.f32 1.0, %v2629_v34  ;;  %2642 = vrcp.f32 %v1618_v31  ;;  %v1803_v46 = vrot.slane %v1796_v26, %v3219_v60  ;;  %v2485_v56 = vpack.c.bf16 %v3702_v24, %v3701_v19  ;;  %2480 = vmatpush3.bf16.msra.mxu1 %v2479_v55  ;;  %v3706_v41 = vld [vmem:[#allocation48_spill] sm:$0xff] }
 0x4b5   : > { %v2633_v18 = vpop.eup %2632  ;;  %2644 = vrcp.f32 %v1619_v45  ;;  %v1701_v37 = vmul.f32 %v2631_v8, %v3278_v15  ;;  %v2482_v14 = vpack.c.bf16 %v3704_v57, %v3703_v6  ;;  %v2488_v31 = vpack.c.bf16 %v3706_v41, %v3705_v29  ;;  %v218_v34 = vld [vmem:[%s217_s7] sm:$0x3]  ;;  %v621_v45 = vpop.permute.xlu1 %620 }
 0x4b6   : > { %2646 = vrcp.f32 %v1620_v2  ;;  %1878 = vrot.lane.b32.xlu1 %v1803_v46, %s2717_s24  ;;  %v1702_v17 = vmul.f32 %v2633_v18, %v3282_v1  ;;  %v2635_v16 = vpop.eup %2634  ;;  %2486 = vmatpush3.bf16.msra.mxu0 %v2485_v56  ;;  %v3707_v26 = vmov 0.0|0.0   ;;  %v3708_v2 = vld [vmem:[#allocation62_spill] sm:$0xff]  ;;  %v632_v18 = vpop.permute.xlu0 %631 }
 0x4b7   : > { %v1621_v10 = vadd.f32 1.0, %v2635_v16  ;;  %v2637_v12 = vpop.eup %2636  ;;  %2481 = vmatprep.subr.bf16.mxu1 %v3707_v26  ;;  %2487 = vmatprep.subr.bf16.mxu0 %v3707_v26  ;;  %v644_v46 = vrot.slane %v3708_v2, %v3219_v60  ;;  %v3710_v26 = vld [vmem:[#allocation53_spill] sm:$0xff] }
 0x4b8   : > { %v1805_v35 = vcombine.low %v1701_v37, %v1702_v17  ;;  %v1703_v53 = vmul.f32 %v2637_v12, %v3271_v63  ;;  %2483 = vmatpush3.bf16.msra.mxu1 %v2482_v14 }
 0x4b9   : > { %2648 = vrcp.f32 %v1621_v10  ;;  %v625_v8 = vpop.permute.xlu1 %624  ;;  %v652_v17 = vrot.slane %v644_v46, %v3219_v60 }
 0x4ba   : > { %v1821_v4 = vrot.slane %v1805_v35, %v3219_v60  ;;  %2489 = vmatpush3.bf16.msra.mxu0 %v2488_v31  ;;  %v1898_v16 = vpop.permute.xlu0 %1897  ;;  %v3709_v35 = vld [vmem:[#allocation56_spill] sm:$0xff] }
 0x4bb   : > { %v663_v12 = vrot.slane %v652_v17, %v3709_v35 }
 0x4bc   : > { %v2639_v28 = vpop.eup %2638  ;;  %v1836_v30 = vcombine.low %v1814_v5, %v1821_v4 }
 0x4bd   : > { %v2641_v49 = vpop.eup %2640  ;;  %v1704_v40 = vmul.f32 %v2639_v28, %v3302_v25  ;;  %v3695_v25 = vld [vmem:[#allocation61_spill] sm:$0xff]  ;;  %2418 = vmatmul.mubr.msk.f32.vlgmr.msra.gmra.mrb[8].mxu0 %vm53_vm0, %v218_v34  ;;  %v636_v37 = vpop.permute.xlu1 %635  ;;  %v670_v4 = vmul.f32 %v663_v12, %v621_v45 }
 0x4be   : > { %v2643_v11 = vpop.eup %2642  ;;  %v1705_v1 = vmul.f32 %v2641_v49, %v3691_v22  ;;  %v1844_v47 = vrot.slane %v1836_v30, %v3219_v60  ;;  %v671_v30 = vmul.f32 %v663_v12, %v625_v8 }
 0x4bf   : > { %v2645_v15 = vpop.eup %2644  ;;  %v1706_v58 = vmul.f32 %v2643_v11, %v3692_v50  ;;  %v1806_v13 = vcombine.low %v1703_v53, %v1704_v40  ;;  %v645_v40 = vcombine.high %v644_v46, %v644_v46 }
 0x4c0   : > { %v2647_v33 = vpop.eup %2646  ;;  %v1707_v9 = vmul.f32 %v2645_v15, %v3693_v0 }
 0x4c1   : > { %v1708_v61 = vmul.f32 %v2647_v33, %v3694_v3  ;;  %v1807_v39 = vcombine.low %v1705_v1, %v1706_v58  ;;  %v1828_v44 = vrot.slane %v1806_v13, %v3219_v60  ;;  %v1902_v10 = vpop.permute.xlu1 %1901  ;;  %v659_v22 = vrot.slane %v645_v40, %v3219_v60 }
 0x4c3   : > { %v1853_v21 = vcombine.low %v1707_v9, %v1708_v61  ;;  %v1835_v63 = vrot.slane %v1807_v39, %v3219_v60  ;;  %v2649_v20 = vpop.eup %2648  ;;  %v667_v13 = vrot.slane %v659_v22, %v3709_v35 }
 0x4c4   : > { %v1709_v38 = vmul.f32 %v2649_v20, %v3695_v25 }
 0x4c5   : > { %v1860_v7 = vrot.slane %v1853_v21, %v3219_v60  ;;  %v1837_v48 = vcombine.low %v1828_v44, %v1835_v63  ;;  %v672_v0 = vmul.f32 %v667_v13, %v632_v18  ;;  %v673_v61 = vmul.f32 %v667_v13, %v636_v37 }
 0x4c6   : > { %v1867_v23 = vrot.slane %v1709_v38, %v3219_v60  ;;  %v3711_v37 = vlaneseq }
 0x4c7   : > { %v1851_v32 = vrot.slane %v1837_v48, %v3219_v60 }
 0x4c8   : > { %v1868_v27 = vcombine.low %v1860_v7, %v1867_v23  ;;  %v2109_v17 = vand.u32 127, %v3711_v37 }
 0x4c9   : > { %v1852_v59 = vcombine.low %v1844_v47, %v1851_v32 }
 0x4ca   : > { %v1875_v36 = vrot.slane %v1868_v27, %v3219_v60 }
 0x4cb   : > { %1880 = vrot.lane.b32.xlu0 %v1852_v59, %s2717_s24 }
 0x4cc   : > { %1882 = vrot.lane.b32.xlu1 %v1875_v36, %s2717_s24 }
 0x4cf   : > { %1908 = vbcast.lane.b32.xlu0 %v1906_v43, 256 }
 0x4d0   : > { %1912 = vbcast.lane.b32.xlu1 %v1906_v43, 264 }
 0x525   : > { %v1877_v5 = vpop.permute.xlu0 %1876 }
 0x526   : > { %v1888_v49 = vadd.f32 %v1877_v5, %v670_v4 }
 0x528   : > { %v1879_v28 = vpop.permute.xlu1 %1878  ;;  %v1914_v11 = vmul.f32 %v1898_v16, %v1888_v49  ;;  %v2112_v16 = vsub.s32 %v2109_v17, %v3696_v42  ;;  %v3718_v42 = vld [vmem:[#allocation54_spill] sm:$0xff] (%p198_p0) }
 0x529   : > { %v1889_v53 = vadd.f32 %v1879_v28, %v671_v30  ;;  %2142 = vst.msk [vmem:[#allocation3] sm:$0x3] (%p198_p0), %vm59_vm3, %v3718_v42 }
 0x52a   : > { %v1919_v1 = vsel %vm1918_vm10, %v1914_v11, 0.0 }
 0x52b   : > { %v1915_v15 = vmul.f32 %v1902_v10, %v1889_v53 }
 0x52d   : > { %v1921_v50 = vsel %vm1920_vm11, %v1915_v15, 0.0 }
 0x52e   : > { %v1922_v58 = vadd.f32 %v1921_v50, %v1919_v1 }
 0x530   : > { %v1923_v3 = vrot.slane %v1922_v58, 4 }
 0x532   : > { %v1924_v25 = vadd.f32 %v1923_v3, %v1922_v58 }
 0x534   : > { %v1925_v48 = vrot.slane %v1924_v25, 2 }
 0x536   : > { %v1926_v27 = vadd.f32 %v1925_v48, %v1924_v25 }
 0x538   : > { %v1927_v62 = vrot.slane %v1926_v27, 1 }
 0x53a   : > { %v1928_v43 = vadd.f32 %v1927_v62, %v1926_v27 }
 0x53d   : > { %v1881_v33 = vpop.permute.xlu0 %1880 }
 0x53e   : > { %v1883_v9 = vpop.permute.xlu1 %1882  ;;  %v1890_v39 = vadd.f32 %v1881_v33, %v672_v0 }
 0x53f   : > { %v1891_v44 = vadd.f32 %v1883_v9, %v673_v61 }
 0x541   : > { %v1909_v21 = vpop.permute.xlu0 %1908 }
 0x542   : > { %v1916_v63 = vmul.f32 %v1909_v21, %v1890_v39  ;;  %v1913_v20 = vpop.permute.xlu1 %1912 }
 0x543   : > { %v1917_v38 = vmul.f32 %v1913_v20, %v1891_v44 }
 0x544   : > { %v1929_v60 = vsel %vm1918_vm10, %v1916_v63, 0.0 }
 0x545   : > { %v1930_v7 = vsel %vm1920_vm11, %v1917_v38, 0.0 }
 0x546   : > { %v1931_v23 = vadd.f32 %v1930_v7, %v1929_v60 }
 0x548   : > { %v1932_v47 = vrot.slane %v1931_v23, 4 }
 0x54a   : > { %v1933_v32 = vadd.f32 %v1932_v47, %v1931_v23 }
 0x54c   : > { %v1934_v59 = vrot.slane %v1933_v32, 2 }
 0x54e   : > { %v1935_v36 = vadd.f32 %v1934_v59, %v1933_v32 }
 0x550   : > { %v1936_v54 = vrot.slane %v1935_v36, 1 }
 0x552   : > { %v1937_v51 = vadd.f32 %v1936_v54, %v1935_v36 }
 0x554   : > { %v1941_v52 = vsel %vm1940_vm12, %v1937_v51, %v1928_v43 }
 0x555   : > { %1942 = vrot.lane.b32.xlu0 %v1941_v52, %s2719_s25 }
 0x559   : > { %2122 = vrot.lane.b32.xlu0 %v1888_v49, %s2719_s25 }
 0x55d   : > { %2124 = vrot.lane.b32.xlu0 %v1889_v53, %s2719_s25 }
 0x561   : > { %2126 = vrot.lane.b32.xlu0 %v1890_v39, %s2719_s25 }
 0x565   : > { %2128 = vrot.lane.b32.xlu0 %v1891_v44, %s2719_s25 }
 0x590   : > { %v2085_v55 = vpop.f32.mrb[8].mxu0 }
 0x591   : > { %v2419_v19 = vpop.f32.mrb[9].mxu0 }
 0x5c7   : > { %v1943_v24 = vpop.permute.xlu0 %1942  }
 0x5c8   : > { %2407 = vmatmul.mubr.msk.f32.vlgmr.msra.gmra.mrb[12].mxu1 %vm53_vm0, %v1943_v24  ;;  %v3712_v62 = vmov %v1943_v24  ;;  %2143 = vst.msk [vmem:[#allocation4] sm:$0x3] (%p198_p0), %vm59_vm3, %v1943_v24 }
 0x5cb   : > { %v2123_v56 = vpop.permute.xlu0 %2122  }
 0x5cc   :  { %2136 = vst.msk [vmem:[#allocation2] sm:$0xff] (%p198_p0), %vm53_vm0, %v2123_v56 }
 0x5cf   : > { %v2125_v57 = vpop.permute.xlu0 %2124  }
 0x5d0   : > { %v3716_v7 = vmov %v2125_v57  ;;  %2138 = vst.msk [vmem:[#allocation2 + $0x8] sm:$0x7] (%p198_p0), %vm55_vm1, %v2125_v57 }
 0x5d3   : > { %v2127_v14 = vpop.permute.xlu0 %2126  }
 0x5d4   :  { %2139 = vst.msk [vmem:[#allocation2 + $0x10] sm:$0xff] (%p198_p0), %vm53_vm0, %v2127_v14 }
 0x5d7   : > { %v2129_v29 = vpop.permute.xlu0 %2128  }
 0x5d8   : > { %v3714_v9 = vmov %v2129_v29  ;;  %2140 = vst.msk [vmem:[#allocation2 + $0x18] sm:$0x7] (%p198_p0), %vm55_vm1, %v2129_v29 }
 0x69b   : > { %v2012_v6 = vpop.f32.mrb[12].mxu1 }
 0x69c   : > { %v2086_v41 = vadd.f32 %v2085_v55, %v2012_v6  ;;  %v2408_v31 = vpop.f32.mrb[13].mxu1  ;;  %v3717_v6 = vmov %v2123_v56 }
 0x69e   : > { %v2095_v34 = vadd.f32 %v3710_v26, %v2086_v41 }
 0x6a0   : > { %v2226_v45 = vmul.f32 -1.442695, %v2095_v34 }
 0x6a2   : > { %2650 = vpow2.f32 %v2226_v45 }
 0x6ac   : > { %v2651_v8 = vpop.eup %2650 }
 0x6ad   : > { %v2099_v2 = vadd.f32 1.0, %v2651_v8  ;;  %v3715_v8 = vmov %v2127_v14 }
 0x6af   : > { %2652 = vrcp.f32 %v2099_v2 }
 0x6b9   : > { %v2653_v46 = vpop.eup %2652 }
 0x6ba   : > { %v2103_v18 = vsel %vm59_vm3, %v2653_v46, 0.0 }
 0x6bb   : > { %2104 = vadd.xlane.f32.xlu1 %v2103_v18 }
 0x747   :  { %200 = sbr.rel (!%p198_p0) target bundleno = 228 (0xe4), region = 93 }
 0x748   : > { %v2105_v10 = vpop.xlane.xlu1 %2104 }
 0x749   : > { %v2106_v35 = vmul.f32 0.03125, %v2105_v10  ;;  %v3713_v10 = vld [vmem:[#allocation54_spill] sm:$0xff] }
 0x74b   : > { %v2113_v12 = vrot.slane %v2106_v35, %v2112_v16 }
 0x74d   : > { %2117 = vst.msk [vmem:[%s2115_s30] sm:$0x1] %vm2116_vm13, %v2113_v12 }

</bundles_post_ra>
